<compile_context>
chip_gen: v7x
topology: tpu7x:2x2x1
jax: 0.10.0
libtpu: 0.0.40
codegen_flags: <defaults>
</compile_context>

<pallas_src>
import functools
import math

import jax
import jax.numpy as jnp
from jax import lax
from jax.experimental import pallas as pl
from jax.experimental.pallas import tpu as pltpu


# ---------------------------------------------------------------------------
# Fused kernel: one batch element per grid step, everything stays in VMEM.
# ---------------------------------------------------------------------------
def _attention_block_kernel(x_ref, m_ref, mt_ref, gnw_ref, gnb_ref,
                            wq_ref, bq_ref, wp_ref, bp_ref,
                            o_ref, qpad_ref, ppad_ref,
                            *, num_heads, num_groups, k_qkv, k_proj, eps, halo):
    _, c, t = x_ref.shape

    # Zero only the halo rows of the pad scratches (the data rows are fully
    # overwritten every grid step). Done every step so it stays correct when the
    # batch axis is sharded across TensorCores (each core has its own scratch).
    zhalo = jnp.zeros((halo, c), jnp.bfloat16)
    if k_qkv > 1:
        qpad_ref[pl.ds(0, halo), :] = zhalo
        qpad_ref[pl.ds(halo + t, halo), :] = zhalo
    if k_proj > 1:
        ppad_ref[pl.ds(0, halo), :] = zhalo
        ppad_ref[pl.ds(halo + t, halo), :] = zhalo

    x_ct = x_ref[0]                                     # [C, T] f32 (HBM layout)
    x = jnp.transpose(x_ct)                             # [T, C] in-VMEM transpose

    # ---- GroupNorm: group stats via MXU matmuls (no sublane reduce chains) ----
    cg = c // num_groups
    inv_n = 1.0 / float(t * cg)
    ones_t = jnp.ones((1, t), jnp.float32)
    s1 = jnp.dot(ones_t, x, preferred_element_type=jnp.float32)        # [1, C]
    s2 = jnp.dot(ones_t, x * x, preferred_element_type=jnp.float32)    # [1, C]
    g_mean = jnp.dot(s1, m_ref[...], preferred_element_type=jnp.float32) * inv_n
    g_msq = jnp.dot(s2, m_ref[...], preferred_element_type=jnp.float32) * inv_n
    # NOTE: single-pass variance E[x^2]-E[x]^2; acceptable for normalized
    # activations (documented risk for large-mean inputs).
    g_inv = lax.rsqrt(g_msq - g_mean * g_mean + eps)                    # [1, G]
    mean_c = jnp.dot(g_mean, mt_ref[...], preferred_element_type=jnp.float32)
    inv_c = jnp.dot(g_inv, mt_ref[...], preferred_element_type=jnp.float32)
    xn = (x - mean_c) * inv_c * gnw_ref[...] + gnb_ref[...]             # [T, C] f32

    # ---- qkv Conv1dSame: bf16 tap matmuls against a zero-padded scratch ----
    pad_l1 = (k_qkv - 1) // 2
    if k_qkv == 1:
        qkv = jnp.dot(xn.astype(jnp.bfloat16), wq_ref[0],
                      preferred_element_type=jnp.float32)
    else:
        qpad_ref[pl.ds(halo, t), :] = xn.astype(jnp.bfloat16)
        qkv = jnp.dot(qpad_ref[pl.ds(halo - pad_l1, t), :], wq_ref[0],
                      preferred_element_type=jnp.float32)
        for j in range(1, k_qkv):
            qkv = qkv + jnp.dot(qpad_ref[pl.ds(halo - pad_l1 + j, t), :], wq_ref[j],
                                preferred_element_type=jnp.float32)
    qkv = qkv + bq_ref[...]                                             # [T, 3C] f32

    # ---- attention (qkv columns were pre-permuted to [q | k | v] blocks) ----
    ch = c // num_heads
    scale = 1.0 / math.sqrt(math.sqrt(ch))
    if k_proj == 1:
        wp0 = wp_ref[0]                                                 # [C, C] bf16
        proj = jnp.zeros((t, c), jnp.float32)
    for h in range(num_heads):
        q = (qkv[:, h * ch:(h + 1) * ch] * scale).astype(jnp.bfloat16)
        k = (qkv[:, c + h * ch:c + (h + 1) * ch] * scale).astype(jnp.bfloat16)
        v = qkv[:, 2 * c + h * ch:2 * c + (h + 1) * ch].astype(jnp.bfloat16)
        # s = q @ k.T without materializing the transpose (NT dot).
        s = lax.dot_general(q, k, (((1,), (1,)), ((), ())),
                            preferred_element_type=jnp.float32)         # [T, T] f32
        e = jnp.exp(s - jnp.max(s, axis=-1, keepdims=True))             # f32
        r = pl.reciprocal(jnp.sum(e, axis=-1, keepdims=True), approx=True)
        o_h = jnp.dot(e.astype(jnp.bfloat16), v,
                      preferred_element_type=jnp.float32) * r           # [T, ch]
        if k_proj == 1:
            proj = proj + jnp.dot(o_h.astype(jnp.bfloat16),
                                  wp0[h * ch:(h + 1) * ch, :],
                                  preferred_element_type=jnp.float32)
        else:
            # write head output straight into the proj-conv scratch (no concat)
            ppad_ref[pl.ds(halo, t), pl.ds(h * ch, ch)] = o_h.astype(jnp.bfloat16)

    # ---- proj Conv1dSame ----
    if k_proj > 1:
        pad_l2 = (k_proj - 1) // 2
        proj = jnp.dot(ppad_ref[pl.ds(halo - pad_l2, t), :], wp_ref[0],
                       preferred_element_type=jnp.float32)
        for j in range(1, k_proj):
            proj = proj + jnp.dot(ppad_ref[pl.ds(halo - pad_l2 + j, t), :], wp_ref[j],
                                  preferred_element_type=jnp.float32)
    proj = proj + bp_ref[...]                                           # [T, C] f32

    # ---- residual, back to the channel-first HBM layout ----
    o_ref[0] = x_ref[0] + jnp.transpose(proj)


# ---------------------------------------------------------------------------
# One-time parameter packing (hoisted out of the forward path).
# ---------------------------------------------------------------------------
def pack_params(raw, *, channels, num_heads, num_groups):
    c, heads, g = channels, num_heads, num_groups
    ch = c // heads
    # PyTorch qkv output channels are head-interleaved [q_h,k_h,v_h]*H ->
    # permute once so the kernel sees contiguous [q | k | v] column blocks.
    perm = []
    for part in range(3):
        for h in range(heads):
            base = h * 3 * ch + part * ch
            perm.extend(range(base, base + ch))
    perm = jnp.asarray(perm, dtype=jnp.int32)

    w_qkv = raw["w_qkv"][perm]                               # [3C, C, Kq]
    b_qkv = raw["b_qkv"][perm]

    grp = jnp.arange(c) // (c // g)
    m = (grp[:, None] == jnp.arange(g)[None, :]).astype(jnp.float32)  # [C, G]

    return {
        "m": m,
        "mt": m.T,
        "gn_w": raw["gn_w"].reshape(1, c).astype(jnp.float32),
        "gn_b": raw["gn_b"].reshape(1, c).astype(jnp.float32),
        # conv tap weights stored tap-major and in bf16 (MXU-native).
        "wq": jnp.transpose(w_qkv, (2, 1, 0)).astype(jnp.bfloat16),        # [Kq, C, 3C]
        "bq": b_qkv.reshape(1, 3 * c).astype(jnp.float32),
        "wp": jnp.transpose(raw["w_proj"], (2, 1, 0)).astype(jnp.bfloat16),  # [Kp, C, C]
        "bp": raw["b_proj"].reshape(1, c).astype(jnp.float32),
    }


# ---------------------------------------------------------------------------
# Helpers.
# ---------------------------------------------------------------------------
def _vmem_limit_bytes(t, c, k_qkv, k_proj, num_groups, halo):
    f32, bf16 = 4, 2
    blocks = 2 * 2 * c * t * f32                               # x + out, double-buffered
    weights = ((2 * c * num_groups + 4 * c + 3 * c) * f32
               + (k_qkv * c * 3 * c + k_proj * c * c) * bf16)
    scratch = 2 * (t + 2 * halo) * c * bf16
    live = 3 * t * c * f32 + 3 * t * t * f32 + 4 * t * c * f32  # qkv + softmax temps
    est = blocks + 2 * weights + scratch + live
    # >= defaults everywhere, <= 56 MiB so it also fits v7x's 64 MiB physical VMEM.
    return int(min(max(4 * est, 32 * 1024 * 1024), 56 * 1024 * 1024))


def _probe_kernel(x_ref, o_ref):
    o_ref[...] = x_ref[...]


@functools.lru_cache(maxsize=None)
def _single_buffer_ok():
    """True iff BlockSpec(pipeline_mode=pl.Buffered(1)) compiles on this JAX/TPU."""
    if not hasattr(pl, "Buffered"):
        return False
    try:
        spec = pl.BlockSpec((8, 128), lambda i: (0, 0), pipeline_mode=pl.Buffered(1))
        out = pl.pallas_call(
            _probe_kernel,
            out_shape=jax.ShapeDtypeStruct((8, 128), jnp.float32),
            grid=(2,),
            in_specs=[spec],
            out_specs=pl.BlockSpec((8, 128), lambda i: (0, 0)),
        )(jnp.zeros((8, 128), jnp.float32))
        jax.block_until_ready(out)
        return True
    except Exception:                       # fall back to default double buffering
        return False


# ---------------------------------------------------------------------------
# AttentionBlock.forward
# ---------------------------------------------------------------------------
def attention_block(x, packed, *, num_heads=1, num_groups=32, eps=1e-5,
                    single_buffer_weights=False):
    b, c = x.shape[0], x.shape[1]
    spatial = x.shape[2:]
    t = math.prod(spatial)
    k_qkv = packed["wq"].shape[0]
    k_proj = packed["wp"].shape[0]

    # Halo sized for the conv padding, rounded to the bf16 sublane packing (16).
    max_pad = max((k_qkv - 1) - (k_qkv - 1) // 2, (k_proj - 1) - (k_proj - 1) // 2, 1)
    halo = max(16, ((max_pad + 15) // 16) * 16)

    # Pure reshape (metadata only): no HBM transpose in the wrapper.
    x_ct = x.reshape(b, c, t).astype(jnp.float32)

    def const_spec(shape):
        idx = lambda i: (0,) * len(shape)
        if single_buffer_weights:
            # Constant-index operands: single buffer so resident weights are not
            # duplicated by the default double-buffering (v7x 64 MiB VMEM).
            return pl.BlockSpec(shape, idx, pipeline_mode=pl.Buffered(1))
        return pl.BlockSpec(shape, idx)

    qpad_shape = (t + 2 * halo, c) if k_qkv > 1 else (16, 128)
    ppad_shape = (t + 2 * halo, c) if k_proj > 1 else (16, 128)

    kernel = functools.partial(
        _attention_block_kernel, num_heads=num_heads, num_groups=num_groups,
        k_qkv=k_qkv, k_proj=k_proj, eps=eps, halo=halo)

    out = pl.pallas_call(
        kernel,
        out_shape=jax.ShapeDtypeStruct((b, c, t), jnp.float32),
        grid_spec=pltpu.PrefetchScalarGridSpec(
            num_scalar_prefetch=0,
            grid=(b,),
            in_specs=[
                pl.BlockSpec((1, c, t), lambda i: (i, 0, 0)),       # x (channel-first)
                const_spec((c, num_groups)),                        # group membership
                const_spec((num_groups, c)),                        # membership^T
                const_spec((1, c)),                                 # gn weight
                const_spec((1, c)),                                 # gn bias
                const_spec((k_qkv, c, 3 * c)),                      # qkv taps (bf16)
                const_spec((1, 3 * c)),                             # qkv bias
                const_spec((k_proj, c, c)),                         # proj taps (bf16)
                const_spec((1, c)),                                 # proj bias
            ],
            out_specs=pl.BlockSpec((1, c, t), lambda i: (i, 0, 0)),
            scratch_shapes=[
                pltpu.VMEM(qpad_shape, jnp.bfloat16),   # padded qkv-conv input
                pltpu.VMEM(ppad_shape, jnp.bfloat16),   # padded proj-conv input
            ],
        ),
        compiler_params=pltpu.CompilerParams(
            dimension_semantics=("parallel",),
            vmem_limit_bytes=_vmem_limit_bytes(t, c, k_qkv, k_proj,
                                               num_groups, halo)),
    )(x_ct, packed["m"], packed["mt"], packed["gn_w"], packed["gn_b"],
      packed["wq"], packed["bq"], packed["wp"], packed["bp"])

    return out.reshape(b, c, *spatial)


# ---------------------------------------------------------------------------
# Pure-JAX reference (mirrors the PyTorch module) for validation.
# ---------------------------------------------------------------------------
def reference(x, raw, *, num_heads=1, num_groups=32, eps=1e-5):
    b, c = x.shape[0], x.shape[1]
    spatial = x.shape[2:]
    t = math.prod(spatial)
    xf = x.reshape(b, c, t).astype(jnp.float32)

    # GroupNorm
    xg = xf.reshape(b, num_groups, -1)
    mean = xg.mean(-1, keepdims=True)
    var = xg.var(-1, keepdims=True)
    xn = ((xg - mean) * lax.rsqrt(var + eps)).reshape(b, c, t)
    xn = xn * raw["gn_w"][None, :, None] + raw["gn_b"][None, :, None]

    def conv1d_same(inp, w, bias):
        k = w.shape[-1]
        p_l = (k - 1) // 2
        p_r = (k - 1) - p_l
        out = lax.conv_general_dilated(
            inp, w, window_strides=(1,), padding=[(p_l, p_r)],
            dimension_numbers=("NCH", "OIH", "NCH"))
        return out + bias[None, :, None]

    qkv = conv1d_same(xn, raw["w_qkv"], raw["b_qkv"])          # [B, 3C, T]
    qkv = qkv.reshape(b * num_heads, -1, t)
    ch = qkv.shape[1] // 3
    q, k, v = jnp.split(qkv, 3, axis=1)
    scale = 1.0 / math.sqrt(math.sqrt(ch))
    w_att = jnp.einsum("bct,bcs->bts", q * scale, k * scale)
    w_att = jax.nn.softmax(w_att, axis=-1)
    h = jnp.einsum("bts,bcs->bct", w_att, v)
    h = h.reshape(b, -1, t)
    h = conv1d_same(h, raw["w_proj"], raw["b_proj"])
    return (xf + h).reshape(b, c, *spatial)


if __name__ == "__main__":
    B, C, H, W = 2, 64, 8, 8          # channels must be >=16 (qkv k = C // 16)
    NUM_HEADS = 1
    NUM_GROUPS = 32
    K_QKV = max(C // 16, 1)           # = 4
    K_PROJ = 5

    key = jax.random.PRNGKey(0)
    ks = jax.random.split(key, 7)
    x = jax.random.normal(ks[0], (B, C, H, W), jnp.float32)

    raw = {
        "gn_w": 1.0 + 0.1 * jax.random.normal(ks[1], (C,), jnp.float32),
        "gn_b": 0.1 * jax.random.normal(ks[2], (C,), jnp.float32),
        "w_qkv": jax.random.normal(ks[3], (3 * C, C, K_QKV), jnp.float32)
                 / math.sqrt(C * K_QKV),
        "b_qkv": 0.05 * jax.random.normal(ks[4], (3 * C,), jnp.float32),
        "w_proj": jax.random.normal(ks[5], (C, C, K_PROJ), jnp.float32)
                  / math.sqrt(C * K_PROJ),
        "b_proj": 0.05 * jax.random.normal(ks[6], (C,), jnp.float32),
    }

    packed = pack_params(raw, channels=C, num_heads=NUM_HEADS,
                         num_groups=NUM_GROUPS)

    fwd = jax.jit(functools.partial(
        attention_block, num_heads=NUM_HEADS, num_groups=NUM_GROUPS,
        single_buffer_weights=_single_buffer_ok()))
    out = jax.block_until_ready(fwd(x, packed))

    ref = reference(x, raw, num_heads=NUM_HEADS, num_groups=NUM_GROUPS)
    assert out.shape == x.shape, out.shape
    err = jnp.abs(out - ref)
    # Tolerances account for bf16 MXU operands (f32 accumulation) vs. a pure-f32
    # reference; a real semantic bug would produce O(1) errors.
    assert float(jnp.max(err)) < 3e-1, float(jnp.max(err))
    assert float(jnp.mean(err)) < 6e-2, float(jnp.mean(err))
    print("KERNEL_OK")
</pallas_src>

<mosaic_0001>
module attributes {stable_mosaic.version = 11 : i64} {
  func.func @_probe_kernel(%arg0: i32, %arg1: memref<8x128xf32, #tpu.memory_space<vmem>>, %arg2: memref<8x128xf32, #tpu.memory_space<vmem>>) attributes {dimension_semantics = [#tpu.dimension_semantics<arbitrary>], iteration_bounds = array<i64: 2>, scalar_prefetch = 0 : i64, scratch_operands = 0 : i64, tpu.core_type = #tpu.core_type<tc>, window_params = [{pipeline_mode = #tpu.pipeline_mode<synchronous>, transform_indices = @transform_0, window_bounds = array<i64: 8, 128>}, {pipeline_mode = #tpu.pipeline_mode<synchronous>, transform_indices = @transform_1, window_bounds = array<i64: 8, 128>}]} {
    %c0 = arith.constant 0 : index
    %c0_0 = arith.constant 0 : index
    %0 = vector.load %arg1[%c0, %c0_0] : memref<8x128xf32, #tpu.memory_space<vmem>>, vector<8x128xf32>
    %c0_1 = arith.constant 0 : index
    %c0_2 = arith.constant 0 : index
    %1 = vector.load %arg2[%c0_1, %c0_2] : memref<8x128xf32, #tpu.memory_space<vmem>>, vector<8x128xf32>
    tpu.vector_store %arg2[%c0_1, %c0_2], %0 {strides = array<i32>} : memref<8x128xf32, #tpu.memory_space<vmem>>, vector<8x128xf32>,
    return
  }
  func.func @transform_0(%arg0: i32) -> (i32, i32) {
    %c0_i32 = arith.constant 0 : i32
    %c0_i32_0 = arith.constant 0 : i32
    %c0_i32_1 = arith.constant 0 : i32
    return %c0_i32, %c0_i32_0 : i32, i32
  }
  func.func @transform_1(%arg0: i32) -> (i32, i32) {
    %c0_i32 = arith.constant 0 : i32
    %c0_i32_0 = arith.constant 0 : i32
    %c0_i32_1 = arith.constant 0 : i32
    return %c0_i32, %c0_i32_0 : i32, i32
  }
}

module attributes {stable_mosaic.version = 11 : i64} {
  func.func @_attention_block_kernel(%arg0: i32, %arg1: memref<1x64x64xf32, #tpu.memory_space<vmem>>, %arg2: memref<64x32xf32, #tpu.memory_space<vmem>>, %arg3: memref<32x64xf32, #tpu.memory_space<vmem>>, %arg4: memref<1x64xf32, #tpu.memory_space<vmem>>, %arg5: memref<1x64xf32, #tpu.memory_space<vmem>>, %arg6: memref<4x64x192xbf16, #tpu.memory_space<vmem>>, %arg7: memref<1x192xf32, #tpu.memory_space<vmem>>, %arg8: memref<5x64x64xbf16, #tpu.memory_space<vmem>>, %arg9: memref<1x64xf32, #tpu.memory_space<vmem>>, %arg10: memref<1x64x64xf32, #tpu.memory_space<vmem>>, %arg11: memref<96x64xbf16, #tpu.memory_space<vmem>>, %arg12: memref<96x64xbf16, #tpu.memory_space<vmem>>) attributes {dimension_semantics = [#tpu.dimension_semantics<parallel>], iteration_bounds = array<i64: 2>, scalar_prefetch = 0 : i64, scratch_operands = 2 : i64, tpu.core_type = #tpu.core_type<tc>, window_params = [{transform_indices = @transform_0, window_bounds = array<i64: 1, 64, 64>}, {pipeline_mode = #tpu.pipeline_mode<synchronous>, transform_indices = @transform_1, window_bounds = array<i64: 64, 32>}, {pipeline_mode = #tpu.pipeline_mode<synchronous>, transform_indices = @transform_2, window_bounds = array<i64: 32, 64>}, {pipeline_mode = #tpu.pipeline_mode<synchronous>, transform_indices = @transform_3, window_bounds = array<i64: 1, 64>}, {pipeline_mode = #tpu.pipeline_mode<synchronous>, transform_indices = @transform_4, window_bounds = array<i64: 1, 64>}, {pipeline_mode = #tpu.pipeline_mode<synchronous>, transform_indices = @transform_5, window_bounds = array<i64: 4, 64, 192>}, {pipeline_mode = #tpu.pipeline_mode<synchronous>, transform_indices = @transform_6, window_bounds = array<i64: 1, 192>}, {pipeline_mode = #tpu.pipeline_mode<synchronous>, transform_indices = @transform_7, window_bounds = array<i64: 5, 64, 64>}, {pipeline_mode = #tpu.pipeline_mode<synchronous>, transform_indices = @transform_8, window_bounds = array<i64: 1, 64>}, {transform_indices = @transform_9, window_bounds = array<i64: 1, 64, 64>}]} {
    %cst = arith.constant 0.000000e+00 : bf16
    %0 = vector.broadcast %cst : bf16 to vector<16x64xbf16>
    %c0 = arith.constant 0 : index
    %c0_0 = arith.constant 0 : index
    %1 = vector.load %arg11[%c0, %c0_0] : memref<96x64xbf16, #tpu.memory_space<vmem>>, vector<16x64xbf16>
    tpu.vector_store %arg11[%c0, %c0_0], %0 {strides = array<i32>} : memref<96x64xbf16, #tpu.memory_space<vmem>>, vector<16x64xbf16>,
    %c80 = arith.constant 80 : index
    %c0_1 = arith.constant 0 : index
    %2 = vector.load %arg11[%c80, %c0_1] : memref<96x64xbf16, #tpu.memory_space<vmem>>, vector<16x64xbf16>
    tpu.vector_store %arg11[%c80, %c0_1], %0 {strides = array<i32>} : memref<96x64xbf16, #tpu.memory_space<vmem>>, vector<16x64xbf16>,
    %c0_2 = arith.constant 0 : index
    %c0_3 = arith.constant 0 : index
    %3 = vector.load %arg12[%c0_2, %c0_3] : memref<96x64xbf16, #tpu.memory_space<vmem>>, vector<16x64xbf16>
    tpu.vector_store %arg12[%c0_2, %c0_3], %0 {strides = array<i32>} : memref<96x64xbf16, #tpu.memory_space<vmem>>, vector<16x64xbf16>,
    %c80_4 = arith.constant 80 : index
    %c0_5 = arith.constant 0 : index
    %4 = vector.load %arg12[%c80_4, %c0_5] : memref<96x64xbf16, #tpu.memory_space<vmem>>, vector<16x64xbf16>
    tpu.vector_store %arg12[%c80_4, %c0_5], %0 {strides = array<i32>} : memref<96x64xbf16, #tpu.memory_space<vmem>>, vector<16x64xbf16>,
    %c0_6 = arith.constant 0 : index
    %c0_7 = arith.constant 0 : index
    %c0_8 = arith.constant 0 : index
    %5 = vector.load %arg1[%c0_6, %c0_7, %c0_8] : memref<1x64x64xf32, #tpu.memory_space<vmem>>, vector<1x64x64xf32>
    %6 = vector.shape_cast %5 : vector<1x64x64xf32> to vector<64x64xf32>
    %7 = tpu.transpose %6, [1, 0] : vector<64x64xf32> -> vector<64x64xf32>
    %cst_9 = arith.constant 1.000000e+00 : f32
    %8 = vector.broadcast %cst_9 : f32 to vector<1x64xf32>
    %cst_10 = arith.constant dense<0.000000e+00> : vector<1x64xf32>
    %9 = tpu.matmul %8, %7, %cst_10 {dimension_numbers = #tpu.dot_dimension_numbers<[1], [0], [0], [1], [0, 0, 1, 1], [], []>} : vector<1x64xf32>, vector<64x64xf32>, vector<1x64xf32> -> vector<1x64xf32>
    %10 = arith.mulf %7, %7 : vector<64x64xf32>
    %cst_11 = arith.constant dense<0.000000e+00> : vector<1x64xf32>
    %11 = tpu.matmul %8, %10, %cst_11 {dimension_numbers = #tpu.dot_dimension_numbers<[1], [0], [0], [1], [0, 0, 1, 1], [], []>} : vector<1x64xf32>, vector<64x64xf32>, vector<1x64xf32> -> vector<1x64xf32>
    %c0_12 = arith.constant 0 : index
    %c0_13 = arith.constant 0 : index
    %12 = vector.load %arg2[%c0_12, %c0_13] : memref<64x32xf32, #tpu.memory_space<vmem>>, vector<64x32xf32>
    %cst_14 = arith.constant dense<0.000000e+00> : vector<1x32xf32>
    %13 = tpu.matmul %9, %12, %cst_14 {dimension_numbers = #tpu.dot_dimension_numbers<[1], [0], [0], [1], [0, 0, 1, 1], [], []>} : vector<1x64xf32>, vector<64x32xf32>, vector<1x32xf32> -> vector<1x32xf32>
    %cst_15 = arith.constant 7.812500e-03 : f32
    %14 = vector.broadcast %cst_15 : f32 to vector<1x32xf32>
    %15 = arith.mulf %13, %14 : vector<1x32xf32>
    %c0_16 = arith.constant 0 : index
    %c0_17 = arith.constant 0 : index
    %16 = vector.load %arg2[%c0_16, %c0_17] : memref<64x32xf32, #tpu.memory_space<vmem>>, vector<64x32xf32>
    %cst_18 = arith.constant dense<0.000000e+00> : vector<1x32xf32>
    %17 = tpu.matmul %11, %16, %cst_18 {dimension_numbers = #tpu.dot_dimension_numbers<[1], [0], [0], [1], [0, 0, 1, 1], [], []>} : vector<1x64xf32>, vector<64x32xf32>, vector<1x32xf32> -> vector<1x32xf32>
    %cst_19 = arith.constant 7.812500e-03 : f32
    %18 = vector.broadcast %cst_19 : f32 to vector<1x32xf32>
    %19 = arith.mulf %17, %18 : vector<1x32xf32>
    %20 = arith.mulf %15, %15 : vector<1x32xf32>
    %21 = arith.subf %19, %20 : vector<1x32xf32>
    %cst_20 = arith.constant 9.99999974E-6 : f32
    %22 = vector.broadcast %cst_20 : f32 to vector<1x32xf32>
    %23 = arith.addf %21, %22 : vector<1x32xf32>
    %24 = math.rsqrt %23 : vector<1x32xf32>
    %c0_21 = arith.constant 0 : index
    %c0_22 = arith.constant 0 : index
    %25 = vector.load %arg3[%c0_21, %c0_22] : memref<32x64xf32, #tpu.memory_space<vmem>>, vector<32x64xf32>
    %cst_23 = arith.constant dense<0.000000e+00> : vector<1x64xf32>
    %26 = tpu.matmul %15, %25, %cst_23 {dimension_numbers = #tpu.dot_dimension_numbers<[1], [0], [0], [1], [0, 0, 1, 1], [], []>} : vector<1x32xf32>, vector<32x64xf32>, vector<1x64xf32> -> vector<1x64xf32>
    %c0_24 = arith.constant 0 : index
    %c0_25 = arith.constant 0 : index
    %27 = vector.load %arg3[%c0_24, %c0_25] : memref<32x64xf32, #tpu.memory_space<vmem>>, vector<32x64xf32>
    %cst_26 = arith.constant dense<0.000000e+00> : vector<1x64xf32>
    %28 = tpu.matmul %24, %27, %cst_26 {dimension_numbers = #tpu.dot_dimension_numbers<[1], [0], [0], [1], [0, 0, 1, 1], [], []>} : vector<1x32xf32>, vector<32x64xf32>, vector<1x64xf32> -> vector<1x64xf32>
    %29 = vector.broadcast %26 : vector<1x64xf32> to vector<64x64xf32>
    %30 = arith.subf %7, %29 : vector<64x64xf32>
    %31 = vector.broadcast %28 : vector<1x64xf32> to vector<64x64xf32>
    %32 = arith.mulf %30, %31 : vector<64x64xf32>
    %c0_27 = arith.constant 0 : index
    %c0_28 = arith.constant 0 : index
    %33 = vector.load %arg4[%c0_27, %c0_28] : memref<1x64xf32, #tpu.memory_space<vmem>>, vector<1x64xf32>
    %34 = vector.broadcast %33 : vector<1x64xf32> to vector<64x64xf32>
    %35 = arith.mulf %32, %34 : vector<64x64xf32>
    %c0_29 = arith.constant 0 : index
    %c0_30 = arith.constant 0 : index
    %36 = vector.load %arg5[%c0_29, %c0_30] : memref<1x64xf32, #tpu.memory_space<vmem>>, vector<1x64xf32>
    %37 = vector.broadcast %36 : vector<1x64xf32> to vector<64x64xf32>
    %38 = arith.addf %35, %37 : vector<64x64xf32>
    %39 = arith.truncf %38 : vector<64x64xf32> to vector<64x64xbf16>
    %c16 = arith.constant 16 : index
    %c0_31 = arith.constant 0 : index
    %40 = vector.load %arg11[%c16, %c0_31] : memref<96x64xbf16, #tpu.memory_space<vmem>>, vector<64x64xbf16>
    tpu.vector_store %arg11[%c16, %c0_31], %39 {strides = array<i32>} : memref<96x64xbf16, #tpu.memory_space<vmem>>, vector<64x64xbf16>,
    %c15 = arith.constant 15 : index
    %c0_32 = arith.constant 0 : index
    %41 = vector.load %arg11[%c15, %c0_32] : memref<96x64xbf16, #tpu.memory_space<vmem>>, vector<64x64xbf16>
    %c0_33 = arith.constant 0 : index
    %c0_34 = arith.constant 0 : index
    %c0_35 = arith.constant 0 : index
    %42 = vector.load %arg6[%c0_33, %c0_34, %c0_35] : memref<4x64x192xbf16, #tpu.memory_space<vmem>>, vector<1x64x192xbf16>
    %43 = vector.shape_cast %42 : vector<1x64x192xbf16> to vector<64x192xbf16>
    %cst_36 = arith.constant dense<0.000000e+00> : vector<64x192xf32>
    %44 = tpu.matmul %41, %43, %cst_36 {dimension_numbers = #tpu.dot_dimension_numbers<[1], [0], [0], [1], [0, 0, 1, 1], [], []>} : vector<64x64xbf16>, vector<64x192xbf16>, vector<64x192xf32> -> vector<64x192xf32>
    %c16_37 = arith.constant 16 : index
    %c0_38 = arith.constant 0 : index
    %45 = vector.load %arg11[%c16_37, %c0_38] : memref<96x64xbf16, #tpu.memory_space<vmem>>, vector<64x64xbf16>
    %c1 = arith.constant 1 : index
    %c0_39 = arith.constant 0 : index
    %c0_40 = arith.constant 0 : index
    %46 = vector.load %arg6[%c1, %c0_39, %c0_40] : memref<4x64x192xbf16, #tpu.memory_space<vmem>>, vector<1x64x192xbf16>
    %47 = vector.shape_cast %46 : vector<1x64x192xbf16> to vector<64x192xbf16>
    %cst_41 = arith.constant dense<0.000000e+00> : vector<64x192xf32>
    %48 = tpu.matmul %45, %47, %cst_41 {dimension_numbers = #tpu.dot_dimension_numbers<[1], [0], [0], [1], [0, 0, 1, 1], [], []>} : vector<64x64xbf16>, vector<64x192xbf16>, vector<64x192xf32> -> vector<64x192xf32>
    %49 = arith.addf %44, %48 : vector<64x192xf32>
    %c17 = arith.constant 17 : index
    %c0_42 = arith.constant 0 : index
    %50 = vector.load %arg11[%c17, %c0_42] : memref<96x64xbf16, #tpu.memory_space<vmem>>, vector<64x64xbf16>
    %c2 = arith.constant 2 : index
    %c0_43 = arith.constant 0 : index
    %c0_44 = arith.constant 0 : index
    %51 = vector.load %arg6[%c2, %c0_43, %c0_44] : memref<4x64x192xbf16, #tpu.memory_space<vmem>>, vector<1x64x192xbf16>
    %52 = vector.shape_cast %51 : vector<1x64x192xbf16> to vector<64x192xbf16>
    %cst_45 = arith.constant dense<0.000000e+00> : vector<64x192xf32>
    %53 = tpu.matmul %50, %52, %cst_45 {dimension_numbers = #tpu.dot_dimension_numbers<[1], [0], [0], [1], [0, 0, 1, 1], [], []>} : vector<64x64xbf16>, vector<64x192xbf16>, vector<64x192xf32> -> vector<64x192xf32>
    %54 = arith.addf %49, %53 : vector<64x192xf32>
    %c18 = arith.constant 18 : index
    %c0_46 = arith.constant 0 : index
    %55 = vector.load %arg11[%c18, %c0_46] : memref<96x64xbf16, #tpu.memory_space<vmem>>, vector<64x64xbf16>
    %c3 = arith.constant 3 : index
    %c0_47 = arith.constant 0 : index
    %c0_48 = arith.constant 0 : index
    %56 = vector.load %arg6[%c3, %c0_47, %c0_48] : memref<4x64x192xbf16, #tpu.memory_space<vmem>>, vector<1x64x192xbf16>
    %57 = vector.shape_cast %56 : vector<1x64x192xbf16> to vector<64x192xbf16>
    %cst_49 = arith.constant dense<0.000000e+00> : vector<64x192xf32>
    %58 = tpu.matmul %55, %57, %cst_49 {dimension_numbers = #tpu.dot_dimension_numbers<[1], [0], [0], [1], [0, 0, 1, 1], [], []>} : vector<64x64xbf16>, vector<64x192xbf16>, vector<64x192xf32> -> vector<64x192xf32>
    %59 = arith.addf %54, %58 : vector<64x192xf32>
    %c0_50 = arith.constant 0 : index
    %c0_51 = arith.constant 0 : index
    %60 = vector.load %arg7[%c0_50, %c0_51] : memref<1x192xf32, #tpu.memory_space<vmem>>, vector<1x192xf32>
    %61 = vector.broadcast %60 : vector<1x192xf32> to vector<64x192xf32>
    %62 = arith.addf %59, %61 : vector<64x192xf32>
    %63 = vector.extract_strided_slice %62 {offsets = [0, 0], sizes = [64, 64], strides = [1, 1]} : vector<64x192xf32> to vector<64x64xf32>
    %cst_52 = arith.constant 0.353553385 : f32
    %64 = vector.broadcast %cst_52 : f32 to vector<64x64xf32>
    %65 = arith.mulf %63, %64 : vector<64x64xf32>
    %66 = arith.truncf %65 : vector<64x64xf32> to vector<64x64xbf16>
    %67 = vector.extract_strided_slice %62 {offsets = [0, 64], sizes = [64, 64], strides = [1, 1]} : vector<64x192xf32> to vector<64x64xf32>
    %cst_53 = arith.constant 0.353553385 : f32
    %68 = vector.broadcast %cst_53 : f32 to vector<64x64xf32>
    %69 = arith.mulf %67, %68 : vector<64x64xf32>
    %70 = arith.truncf %69 : vector<64x64xf32> to vector<64x64xbf16>
    %71 = vector.extract_strided_slice %62 {offsets = [0, 128], sizes = [64, 64], strides = [1, 1]} : vector<64x192xf32> to vector<64x64xf32>
    %72 = arith.truncf %71 : vector<64x64xf32> to vector<64x64xbf16>
    %cst_54 = arith.constant dense<0.000000e+00> : vector<64x64xf32>
    %73 = tpu.matmul %66, %70, %cst_54 {dimension_numbers = #tpu.dot_dimension_numbers<[1], [1], [0], [0], [0, 0, 1, 0], [], []>} : vector<64x64xbf16>, vector<64x64xbf16>, vector<64x64xf32> -> vector<64x64xf32>
    %cst_55 = arith.constant dense<0xFF800000> : vector<64xf32>
    %74 = vector.multi_reduction <maximumf>, %73, %cst_55 [1] : vector<64x64xf32> to vector<64xf32>
    %75 = vector.shape_cast %74 : vector<64xf32> to vector<64x1xf32>
    %76 = vector.broadcast %75 : vector<64x1xf32> to vector<64x64xf32>
    %77 = arith.subf %73, %76 : vector<64x64xf32>
    %78 = math.exp %77 : vector<64x64xf32>
    %cst_56 = arith.constant dense<0.000000e+00> : vector<64xf32>
    %79 = vector.multi_reduction <add>, %78, %cst_56 [1] : vector<64x64xf32> to vector<64xf32>
    %80 = vector.shape_cast %79 : vector<64xf32> to vector<64x1xf32>
    %81 = tpu.reciprocal %80 {approx = true} : vector<64x1xf32> -> vector<64x1xf32>
    %82 = arith.truncf %78 : vector<64x64xf32> to vector<64x64xbf16>
    %cst_57 = arith.constant dense<0.000000e+00> : vector<64x64xf32>
    %83 = tpu.matmul %82, %72, %cst_57 {dimension_numbers = #tpu.dot_dimension_numbers<[1], [0], [0], [1], [0, 0, 1, 1], [], []>} : vector<64x64xbf16>, vector<64x64xbf16>, vector<64x64xf32> -> vector<64x64xf32>
    %84 = vector.broadcast %81 : vector<64x1xf32> to vector<64x64xf32>
    %85 = arith.mulf %83, %84 : vector<64x64xf32>
    %86 = arith.truncf %85 : vector<64x64xf32> to vector<64x64xbf16>
    %c16_58 = arith.constant 16 : index
    %c0_59 = arith.constant 0 : index
    %87 = vector.load %arg12[%c16_58, %c0_59] : memref<96x64xbf16, #tpu.memory_space<vmem>>, vector<64x64xbf16>
    tpu.vector_store %arg12[%c16_58, %c0_59], %86 {strides = array<i32>} : memref<96x64xbf16, #tpu.memory_space<vmem>>, vector<64x64xbf16>,
    %c14 = arith.constant 14 : index
    %c0_60 = arith.constant 0 : index
    %88 = vector.load %arg12[%c14, %c0_60] : memref<96x64xbf16, #tpu.memory_space<vmem>>, vector<64x64xbf16>
    %c0_61 = arith.constant 0 : index
    %c0_62 = arith.constant 0 : index
    %c0_63 = arith.constant 0 : index
    %89 = vector.load %arg8[%c0_61, %c0_62, %c0_63] : memref<5x64x64xbf16, #tpu.memory_space<vmem>>, vector<1x64x64xbf16>
    %90 = vector.shape_cast %89 : vector<1x64x64xbf16> to vector<64x64xbf16>
    %cst_64 = arith.constant dense<0.000000e+00> : vector<64x64xf32>
    %91 = tpu.matmul %88, %90, %cst_64 {dimension_numbers = #tpu.dot_dimension_numbers<[1], [0], [0], [1], [0, 0, 1, 1], [], []>} : vector<64x64xbf16>, vector<64x64xbf16>, vector<64x64xf32> -> vector<64x64xf32>
    %c15_65 = arith.constant 15 : index
    %c0_66 = arith.constant 0 : index
    %92 = vector.load %arg12[%c15_65, %c0_66] : memref<96x64xbf16, #tpu.memory_space<vmem>>, vector<64x64xbf16>
    %c1_67 = arith.constant 1 : index
    %c0_68 = arith.constant 0 : index
    %c0_69 = arith.constant 0 : index
    %93 = vector.load %arg8[%c1_67, %c0_68, %c0_69] : memref<5x64x64xbf16, #tpu.memory_space<vmem>>, vector<1x64x64xbf16>
    %94 = vector.shape_cast %93 : vector<1x64x64xbf16> to vector<64x64xbf16>
    %cst_70 = arith.constant dense<0.000000e+00> : vector<64x64xf32>
    %95 = tpu.matmul %92, %94, %cst_70 {dimension_numbers = #tpu.dot_dimension_numbers<[1], [0], [0], [1], [0, 0, 1, 1], [], []>} : vector<64x64xbf16>, vector<64x64xbf16>, vector<64x64xf32> -> vector<64x64xf32>
    %96 = arith.addf %91, %95 : vector<64x64xf32>
    %c16_71 = arith.constant 16 : index
    %c0_72 = arith.constant 0 : index
    %97 = vector.load %arg12[%c16_71, %c0_72] : memref<96x64xbf16, #tpu.memory_space<vmem>>, vector<64x64xbf16>
    %c2_73 = arith.constant 2 : index
    %c0_74 = arith.constant 0 : index
    %c0_75 = arith.constant 0 : index
    %98 = vector.load %arg8[%c2_73, %c0_74, %c0_75] : memref<5x64x64xbf16, #tpu.memory_space<vmem>>, vector<1x64x64xbf16>
    %99 = vector.shape_cast %98 : vector<1x64x64xbf16> to vector<64x64xbf16>
    %cst_76 = arith.constant dense<0.000000e+00> : vector<64x64xf32>
    %100 = tpu.matmul %97, %99, %cst_76 {dimension_numbers = #tpu.dot_dimension_numbers<[1], [0], [0], [1], [0, 0, 1, 1], [], []>} : vector<64x64xbf16>, vector<64x64xbf16>, vector<64x64xf32> -> vector<64x64xf32>
    %101 = arith.addf %96, %100 : vector<64x64xf32>
    %c17_77 = arith.constant 17 : index
    %c0_78 = arith.constant 0 : index
    %102 = vector.load %arg12[%c17_77, %c0_78] : memref<96x64xbf16, #tpu.memory_space<vmem>>, vector<64x64xbf16>
    %c3_79 = arith.constant 3 : index
    %c0_80 = arith.constant 0 : index
    %c0_81 = arith.constant 0 : index
    %103 = vector.load %arg8[%c3_79, %c0_80, %c0_81] : memref<5x64x64xbf16, #tpu.memory_space<vmem>>, vector<1x64x64xbf16>
    %104 = vector.shape_cast %103 : vector<1x64x64xbf16> to vector<64x64xbf16>
    %cst_82 = arith.constant dense<0.000000e+00> : vector<64x64xf32>
    %105 = tpu.matmul %102, %104, %cst_82 {dimension_numbers = #tpu.dot_dimension_numbers<[1], [0], [0], [1], [0, 0, 1, 1], [], []>} : vector<64x64xbf16>, vector<64x64xbf16>, vector<64x64xf32> -> vector<64x64xf32>
    %106 = arith.addf %101, %105 : vector<64x64xf32>
    %c18_83 = arith.constant 18 : index
    %c0_84 = arith.constant 0 : index
    %107 = vector.load %arg12[%c18_83, %c0_84] : memref<96x64xbf16, #tpu.memory_space<vmem>>, vector<64x64xbf16>
    %c4 = arith.constant 4 : index
    %c0_85 = arith.constant 0 : index
    %c0_86 = arith.constant 0 : index
    %108 = vector.load %arg8[%c4, %c0_85, %c0_86] : memref<5x64x64xbf16, #tpu.memory_space<vmem>>, vector<1x64x64xbf16>
    %109 = vector.shape_cast %108 : vector<1x64x64xbf16> to vector<64x64xbf16>
    %cst_87 = arith.constant dense<0.000000e+00> : vector<64x64xf32>
    %110 = tpu.matmul %107, %109, %cst_87 {dimension_numbers = #tpu.dot_dimension_numbers<[1], [0], [0], [1], [0, 0, 1, 1], [], []>} : vector<64x64xbf16>, vector<64x64xbf16>, vector<64x64xf32> -> vector<64x64xf32>
    %111 = arith.addf %106, %110 : vector<64x64xf32>
    %c0_88 = arith.constant 0 : index
    %c0_89 = arith.constant 0 : index
    %112 = vector.load %arg9[%c0_88, %c0_89] : memref<1x64xf32, #tpu.memory_space<vmem>>, vector<1x64xf32>
    %113 = vector.broadcast %112 : vector<1x64xf32> to vector<64x64xf32>
    %114 = arith.addf %111, %113 : vector<64x64xf32>
    %c0_90 = arith.constant 0 : index
    %c0_91 = arith.constant 0 : index
    %c0_92 = arith.constant 0 : index
    %115 = vector.load %arg1[%c0_90, %c0_91, %c0_92] : memref<1x64x64xf32, #tpu.memory_space<vmem>>, vector<1x64x64xf32>
    %116 = vector.shape_cast %115 : vector<1x64x64xf32> to vector<64x64xf32>
    %117 = tpu.transpose %114, [1, 0] : vector<64x64xf32> -> vector<64x64xf32>
    %118 = arith.addf %116, %117 : vector<64x64xf32>
    %c0_93 = arith.constant 0 : index
    %c0_94 = arith.constant 0 : index
    %c0_95 = arith.constant 0 : index
    %119 = vector.load %arg10[%c0_93, %c0_94, %c0_95] : memref<1x64x64xf32, #tpu.memory_space<vmem>>, vector<1x64x64xf32>
    %120 = vector.shape_cast %119 : vector<1x64x64xf32> to vector<64x64xf32>
    %121 = vector.shape_cast %118 : vector<64x64xf32> to vector<1x64x64xf32>
    tpu.vector_store %arg10[%c0_93, %c0_94, %c0_95], %121 {strides = array<i32>} : memref<1x64x64xf32, #tpu.memory_space<vmem>>, vector<1x64x64xf32>,
    return
  }
  func.func @transform_0(%arg0: i32) -> (i32, i32, i32) {
    %c0_i32 = arith.constant 0 : i32
    %c0_i32_0 = arith.constant 0 : i32
    %c0_i32_1 = arith.constant 0 : i32
    return %arg0, %c0_i32, %c0_i32_0 : i32, i32, i32
  }
  func.func @transform_1(%arg0: i32) -> (i32, i32) {
    %c0_i32 = arith.constant 0 : i32
    %c0_i32_0 = arith.constant 0 : i32
    %c0_i32_1 = arith.constant 0 : i32
    return %c0_i32, %c0_i32_0 : i32, i32
  }
  func.func @transform_2(%arg0: i32) -> (i32, i32) {
    %c0_i32 = arith.constant 0 : i32
    %c0_i32_0 = arith.constant 0 : i32
    %c0_i32_1 = arith.constant 0 : i32
    return %c0_i32, %c0_i32_0 : i32, i32
  }
  func.func @transform_3(%arg0: i32) -> (i32, i32) {
    %c0_i32 = arith.constant 0 : i32
    %c0_i32_0 = arith.constant 0 : i32
    %c0_i32_1 = arith.constant 0 : i32
    return %c0_i32, %c0_i32_0 : i32, i32
  }
  func.func @transform_4(%arg0: i32) -> (i32, i32) {
    %c0_i32 = arith.constant 0 : i32
    %c0_i32_0 = arith.constant 0 : i32
    %c0_i32_1 = arith.constant 0 : i32
    return %c0_i32, %c0_i32_0 : i32, i32
  }
  func.func @transform_5(%arg0: i32) -> (i32, i32, i32) {
    %c0_i32 = arith.constant 0 : i32
    %c0_i32_0 = arith.constant 0 : i32
    %c0_i32_1 = arith.constant 0 : i32
    %c0_i32_2 = arith.constant 0 : i32
    return %c0_i32, %c0_i32_0, %c0_i32_1 : i32, i32, i32
  }
  func.func @transform_6(%arg0: i32) -> (i32, i32) {
    %c0_i32 = arith.constant 0 : i32
    %c0_i32_0 = arith.constant 0 : i32
    %c0_i32_1 = arith.constant 0 : i32
    return %c0_i32, %c0_i32_0 : i32, i32
  }
  func.func @transform_7(%arg0: i32) -> (i32, i32, i32) {
    %c0_i32 = arith.constant 0 : i32
    %c0_i32_0 = arith.constant 0 : i32
    %c0_i32_1 = arith.constant 0 : i32
    %c0_i32_2 = arith.constant 0 : i32
    return %c0_i32, %c0_i32_0, %c0_i32_1 : i32, i32, i32
  }
  func.func @transform_8(%arg0: i32) -> (i32, i32) {
    %c0_i32 = arith.constant 0 : i32
    %c0_i32_0 = arith.constant 0 : i32
    %c0_i32_1 = arith.constant 0 : i32
    return %c0_i32, %c0_i32_0 : i32, i32
  }
  func.func @transform_9(%arg0: i32) -> (i32, i32, i32) {
    %c0_i32 = arith.constant 0 : i32
    %c0_i32_0 = arith.constant 0 : i32
    %c0_i32_1 = arith.constant 0 : i32
    return %arg0, %c0_i32, %c0_i32_0 : i32, i32, i32
  }
}

</mosaic_0001>

<bundles_post_ra>
// kernel: tpu_custom_call.1
= control target key start
LH: loop header
LB: loop body
LE: loop exit
PB: predicated region body
PF: predicated region fallthrough
CT: control target
= control target key end

     0   :  { %6 = vsyncpa [#allocation3], 0  ;;  %s340_s0 = inlined_call_operand.hbm [shape: f32[8,128], index: 0, kind: input, shape index: {}]   ;;  %s341_s1 = inlined_call_operand.hbm [shape: f32[8,128], index: 1, kind: output, shape index: {}]  }
   0x1   :  { %7 = vsyncpa [#allocation4], 0  ;;  %s261_s6 = smov 0  }
   0x2 LB: > { %s144_s7 = sadd.s32 4294967295, %s247_s6   ;;  %p145_p0 = scmp.ge.s32.totalorder %s247_s6, 1  ;;  %s247_s6 = sphi %s261_s6, %s13_s6  }
   0x3   : > { %p60_p1 = scmp.lt.s32.totalorder %s247_s6, 3  ;;  %p275_p3 = scmp.eq.s32.totalorder %s144_s7, 0 }
   0x4   : > { %s249_s10 = smov [#allocation2]   ;;  %s179_s15 = scalar_lea.hbm %s340_s0, 128 }
   0x5   : > { %p269_p2 = pnand %p145_p0, %p60_p1  ;;  %s73_s11 = sshll.u32 %s249_s10, 4  ;;  %s74_s11 = int_to_ptr.vmem [resolvable:$true] %s73_s11 }
   0x6   : > { %s346_s9 = scalar_select %p275_p3, 1, 0 }
   0x7   : > { %s345_s8 = scalar_select %p269_p2, 1, 0 }
   0x8   : > { %p161_p4 = pneg %p269_p2  ;;  %p180_p6 = scmp.ne.s32.totalorder %s340_s0, %s179_s15 }
   0x9   : > { %p186_p10 = scmp.lt.u32.totalorder %s179_s15, %s340_s0 }
   0xa   : > { %p283_p5 = pnand %p275_p3, %p161_p4 }
   0xc   : > { %p181_p7 = pneg %p283_p5 }
   0xe   : > { %p182_p8 = pnand %p181_p7, %p180_p6 }
  0x10   : > { %p183_p9 = pneg %p182_p8 }
  0x12   : > { %p188_p11 = pnand %p186_p10, %p183_p9 }
  0x14   : > { %191 = shalt.err (!%p188_p11)
}
  0x15   : > { %s192_s20 = scalar_lea.vmem %s74_s11, 128  ;;  %p200_p1 = scmp.lt.s32.totalorder %s74_s11, %s74_s11 }
  0x16   : > { %p193_p12 = scmp.ne.s32.totalorder %s74_s11, %s192_s20  ;;  %p201_p4 = scmp.lt.s32.totalorder %s192_s20, %s192_s20 }
  0x18   : > { %p195_p13 = pnand %p193_p12, %p181_p7  ;;  %p202_p3 = por %p201_p4, %p200_p1 }
  0x1a   : > { %p196_p0 = pneg %p195_p13 }
  0x1c   : > { %p203_p2 = pnand %p202_p3, %p196_p0 }
  0x1e   : > { %206 = shalt.err (!%p203_p2)
}
  0x1f   : > { %164 = dma.hbm_to_vmem [thread:$0]  (!%p283_p5), %s340_s0, 128, %s74_s11, [#allocation3]  }
  0x20   : > { %p348_p6 = scmp.ne.s32.totalorder %s345_s8, 0 }
  0x21   : > { %p349_p8 = scmp.ne.s32.totalorder (!%p348_p6), %s346_s9, 0 }
  0x22   : > { %86 = sbr.rel (%p348_p6) target bundleno = 67 (0x43), region = 24 }
  0x29   : > { %238 = dma.done.wait (%p349_p8), [#allocation3], 128  }
  0x2a   : > { %240 = vsyncadd (%p349_p8), [#allocation3], 4294967168  ;;  %s250_s23 = smov [#allocation5]   ;;  %p311_p2 = scmp.eq.s32.totalorder %s144_s7, 1  ;;  %v96_v0 = vld [vmem:[#allocation2] sm:$0xff] }
  0x2b   : > { %s105_s24 = sshll.u32 %s250_s23, 4  ;;  %97 = vst [vmem:[#allocation5] sm:$0xff] %v96_v0  ;;  %s106_s24 = int_to_ptr.vmem [resolvable:$true] %s105_s24 }
  0x2c   : > { %s207_s26 = scalar_lea.vmem %s106_s24, 128  ;;  %p214_p9 = scmp.lt.s32.totalorder %s106_s24, %s106_s24 }
  0x2d   : > { %p208_p3 = scmp.ne.s32.totalorder %s106_s24, %s207_s26  ;;  %p215_p10 = scmp.lt.s32.totalorder %s207_s26, %s207_s26 }
  0x2f   : > { %p209_p5 = pnand %p208_p3, %p311_p2  ;;  %p216_p11 = por %p215_p10, %p214_p9 }
  0x31   : > { %p210_p7 = pneg %p209_p5 }
  0x33   : > { %p217_p12 = pnand %p216_p11, %p210_p7 }
  0x35   : > { %220 = shalt.err (!%p217_p12)
}
  0x36   : > { %s221_s29 = scalar_lea.hbm %s341_s1, 128 }
  0x37   : > { %p222_p13 = scmp.ne.s32.totalorder %s341_s1, %s221_s29  ;;  %p227_p4 = scmp.lt.u32.totalorder %s221_s29, %s341_s1 }
  0x39   : > { %p223_p0 = pnand %p222_p13, %p311_p2 }
  0x3b   : > { %p224_p1 = pneg %p223_p0 }
  0x3d   : > { %p229_p6 = pnand %p227_p4, %p224_p1 }
  0x3f   : > { %232 = shalt.err (!%p229_p6)
}
  0x40   : > { %158 = dma.vmem_to_hbm [thread:$0]  (%p311_p2), %s106_s24, 128, %s341_s1, [#allocation4]  }
  0x41   : > { %242 = dma.done.wait (%p311_p2), [#allocation4], 128  }
  0x42   : > { %244 = vsyncadd (%p311_p2), [#allocation4], 4294967168 }
  0x43 PF: > { %s13_s6 = sadd.s32 1, %s247_s6  }
  0x44   : > { %p10_p8 = scmp.ge.s32.totalorder %s13_s6, 4  }
  0x46   :  { %12 = sbr.rel (!%p10_p8) target bundleno = 2 (0x2), region = 53 }
  0x4d   :  { %118 = vsyncpa [#allocation3], 1 }
  0x4e   :  { %120 = vsyncpa [#allocation3 + $0x1], 1 }
  0x4f   :  { %121 = vsyncpa [#allocation4], 1 }
  0x50   :  { %123 = vsyncpa [#allocation4 + $0x1], 1 }

// kernel: attention_block.1
= control target key start
LH: loop header
LB: loop body
LE: loop exit
PB: predicated region body
PF: predicated region fallthrough
CT: control target
= control target key end

     0   :  { %14 = vsyncpa [#allocation5], 0  ;;  %s3551_s30 = smov 0   ;;  %s4132_s0 = inlined_call_operand.vmem [shape: f32[2,64,64], index: 0, kind: input, shape index: {}]   ;;  %s4133_s1 = inlined_call_operand.vmem [shape: f32[64,32], index: 1, kind: input, shape index: {}]   ;;  %s4134_s2 = inlined_call_operand.vmem [shape: f32[32,64], index: 2, kind: input, shape index: {}]   ;;  %s4135_s3 = inlined_call_operand.vmem [shape: f32[1,64], index: 3, kind: input, shape index: {}]   ;;  %s4136_s4 = inlined_call_operand.vmem [shape: f32[1,64], index: 4, kind: input, shape index: {}]   ;;  %s4137_s5 = inlined_call_operand.vmem [shape: bf16[4,64,192], index: 5, kind: input, shape index: {}]   ;;  %s4138_s6 = inlined_call_operand.vmem [shape: f32[1,192], index: 6, kind: input, shape index: {}]   ;;  %s4139_s7 = inlined_call_operand.hbm [shape: bf16[5,64,64], index: 7, kind: input, shape index: {}]   ;;  %s4140_s8 = inlined_call_operand.vmem [shape: f32[1,64], index: 8, kind: input, shape index: {}]   ;;  %s4141_s9 = inlined_call_operand.vmem [shape: f32[2,64,64], index: 9, kind: output, shape index: {}]  }
   0x1 LB: > { %s3557_s10 = sadd.s32 4294967295, %s3490_s30   ;;  %p2725_p0 = scmp.ge.s32.totalorder %s3490_s30, 1  ;;  %s3490_s30 = sphi %s3551_s30, %s20_s30  }
   0x2   : > { %p245_p1 = scmp.lt.s32.totalorder %s3490_s30, 3  ;;  %s3492_s11 = smov [#allocation4]  }
   0x3   : > { %s275_s12 = sshll.u32 %s3492_s11, 4  ;;  %p4142_p3 = scmp.eq.s32.totalorder %s3557_s10, 0  ;;  %s276_s12 = int_to_ptr.vmem [resolvable:$true] %s275_s12 }
   0x4   : > { %p3561_p2 = pnand %p2725_p0, %p245_p1  ;;  %s3452_s17 = scalar_lea.hbm %s4139_s7, 2560 }
   0x5   : > { %p3453_p6 = scmp.ne.s32.totalorder %s4139_s7, %s3452_s17  ;;  %p3459_p10 = scmp.lt.u32.totalorder %s3452_s17, %s4139_s7 }
   0x6   : > { %s4144_s13 = scalar_select %p3561_p2, 1, 0 }
   0x7   : > { %p3327_p4 = pneg %p3561_p2 }
   0x9   : > { %p3570_p5 = pnand %p4142_p3, %p3327_p4 }
   0xb   : > { %p3454_p7 = pneg %p3570_p5 }
   0xd   : > { %p3455_p8 = pnand %p3454_p7, %p3453_p6 }
   0xf   : > { %p3456_p9 = pneg %p3455_p8 }
  0x11   : > { %p3461_p11 = pnand %p3459_p10, %p3456_p9 }
  0x13   : > { %3464 = shalt.err (!%p3461_p11)
}
  0x14   : > { %s3465_s22 = scalar_lea.vmem %s276_s12, 2560  ;;  %p3473_p1 = scmp.lt.s32.totalorder %s276_s12, %s276_s12 }
  0x15   : > { %p3466_p12 = scmp.ne.s32.totalorder %s276_s12, %s3465_s22  ;;  %p3474_p4 = scmp.lt.s32.totalorder %s3465_s22, %s3465_s22 }
  0x17   : > { %p3468_p13 = pnand %p3466_p12, %p3454_p7  ;;  %p3475_p3 = por %p3474_p4, %p3473_p1 }
  0x19   : > { %p3469_p0 = pneg %p3468_p13 }
  0x1b   : > { %p3476_p2 = pnand %p3475_p3, %p3469_p0 }
  0x1d   : > { %3479 = shalt.err (!%p3476_p2)
}
  0x1e   : > { %s3493_s23 = smov 64   ;;  %s3494_s24 = smov 4  }
  0x1f   : > { %3330 = dma.hbm_to_vmem [thread:$0]  (!%p3570_p5), %s4139_s7, 2560, %s276_s12, [#allocation5], %s3493_s23, %s3493_s23, %s3494_s24  }
  0x20   : > { %p4146_p6 = scmp.ne.s32.totalorder %s4144_s13, 0 }
  0x21   : > { %p4147_p8 = scmp.eq.s32.totalorder (!%p4146_p6), %s3557_s10, 0 }
  0x22   : > { %302 = sbr.rel (%p4146_p6) target bundleno = 2409 (0x969), region = 56 }
  0x29   : > { %3485 = dma.done.wait (%p4147_p8), [#allocation5], 2560   ;;  %p4148_p7 = pmov %p4147_p8 }
  0x2a   : > { %p338_p2 = scmp.lt.s32.totalorder %s3557_s10, 1  ;;  %v3495_v3 = vmov 0.0|0.0   ;;  %vm3496_vm0 = vmmov 0   ;;  %v3497_v9 = vmov 0.0   ;;  %v545_v30 = vld [vmem:[%s4133_s1] sm:$0xff]  ;;  %v546_v31 = vld [vmem:[%s4133_s1 + $0x8] sm:$0xff] }
  0x2b   : > { %3487 = vsyncadd (%p4148_p7), [#allocation5], 4294964736  ;;  %3179 = vmatprep.subr.bf16.mxu0 %v3495_v3  ;;  %3191 = vmatprep.subr.bf16.mxu1 %v3495_v3  ;;  %vm349_vm1 = vcmask 523264   ;;  %v3204_v36 = vpack.c.bf16 %v546_v31, %v545_v30  ;;  %v547_v37 = vld [vmem:[%s4133_s1 + $0x10] sm:$0xff]  ;;  %v548_v38 = vld [vmem:[%s4133_s1 + $0x18] sm:$0xff]  ;;  %v3498_v39 = vmov 1.0  }
  0x2c   : > { %s4150_s10 = smov (!%p338_p2, %s3557_s10), 1  ;;  %2985 = vmatprep.mubr.msk.f32.mxu0 %vm3496_vm0, %v3497_v9  ;;  %3004 = vmatprep.mubr.msk.f32.mxu1 %vm3496_vm0, %v3497_v9  ;;  %v3207_v40 = vpack.c.bf16 %v548_v38, %v547_v37  ;;  %v549_v41 = vld [vmem:[%s4133_s1 + $0x20] sm:$0xff]  ;;  %v550_v42 = vld [vmem:[%s4133_s1 + $0x28] sm:$0xff]  ;;  %v551_v44 = vld [vmem:[%s4133_s1 + $0x30] sm:$0xff]  ;;  %vm709_vm2 = vcmask 261120   ;;  %vm1430_vm3 = vcmask 1046528  }
  0x2d   : > { %s2865_s27 = sshll.u32 %s4150_s10, 6  ;;  %v3210_v43 = vpack.c.bf16 %v550_v42, %v549_v41  ;;  %v552_v45 = vld [vmem:[%s4133_s1 + $0x38] sm:$0xff]  ;;  %v705_v47 = vld [vmem:[%s4134_s2] sm:$0xff]  ;;  %v706_v48 = vld [vmem:[%s4134_s2 + $0x8] sm:$0xff]  ;;  %vm1065_vm4 = vsmask.f32 256 }
  0x2e   : > { %s3606_s11 = scalar_lea.vmem %s4132_s0, %s2865_s27  ;;  %v3213_v46 = vpack.c.bf16 %v552_v45, %v551_v44  ;;  %v3228_v49 = vpack.c.bf16 %v706_v48, %v705_v47  ;;  %v707_v54 = vld [vmem:[%s4134_s2 + $0x10] sm:$0xff]  ;;  %v708_v55 = vld [vmem:[%s4134_s2 + $0x18] sm:$0xff]  ;;  %vm1237_vm5 = vsmask.f32 7424  ;;  %s3500_s21 = smov 64   ;;  %vm2068_vm6 = vcmask 1040384  }
  0x2f   : > { %v354_v0 = vld [vmem:[%s3606_s11] sm:$0xff]  ;;  %v355_v1 = vld [vmem:[%s3606_s11 + $0x8] sm:$0xff]  ;;  %v356_v2 = vld [vmem:[%s3606_s11 + $0x10] sm:$0xff]  ;;  %v3231_v56 = vpack.c.bf16 %v708_v55, %v707_v54  ;;  %s4104_s26 = scalar_lea.vmem %s4141_s9, %s2865_s27 }
  0x30   : > { %362 = vxpose.xlu0.b32.start [1/8] (short) (narrow) %v354_v0, 64  ;;  %v357_v4 = vld [vmem:[%s3606_s11 + $0x18] sm:$0xff]  ;;  %v358_v5 = vld [vmem:[%s3606_s11 + $0x20] sm:$0xff]  ;;  %v359_v6 = vld [vmem:[%s3606_s11 + $0x28] sm:$0xff] }
  0x31   : > { %v360_v7 = vld [vmem:[%s3606_s11 + $0x30] sm:$0xff]  ;;  %v361_v8 = vld [vmem:[%s3606_s11 + $0x38] sm:$0xff] }
  0x34   : > { %363 = vxpose.xlu0.b32.cont [2/8] (short) (narrow) %v355_v1, 64 }
  0x38   : > { %364 = vxpose.xlu0.b32.cont [3/8] (short) (narrow) %v356_v2, 64 }
  0x3c   : > { %365 = vxpose.xlu0.b32.cont [4/8] (short) (narrow) %v357_v4, 64 }
  0x40   : > { %366 = vxpose.xlu0.b32.cont [5/8] (short) (narrow) %v358_v5, 64  ;;  %v3731_v5 = vld [vmem:[%s4138_s6] sm:$0x3] }
  0x44   : > { %367 = vxpose.xlu0.b32.cont [6/8] (short) (narrow) %v359_v6, 64 }
  0x48   : > { %368 = vxpose.xlu0.b32.cont [7/8] (short) (narrow) %v360_v7, 64 }
  0x4c   : > { %369 = vxpose.xlu0.b32.end [8/8] (short) (narrow) %v361_v8, 64  ;;  %v3352_v8 = vld [vmem:[%s4137_s5 + $0x44] ss:$8 sps:$4 sm:$0xff]  }
  0xb0   : > { %v3622_v10 = vpop.trf.xlu0 }
  0xb1   : > { %v467_v13 = vmul.f32 %v3622_v10, %v3622_v10 }
  0xb4   : > { %v3624_v11 = vpop.trf.xlu0 }
  0xb5   : > { %v3180_v12 = vpack.c.bf16 %v3624_v11, %v3622_v10  ;;  %v468_v14 = vmul.f32 %v3624_v11, %v3624_v11 }
  0xb7   : > { %3181 = vmatpush3.bf16.msra.mxu0 %v3180_v12  ;;  %v3192_v15 = vpack.c.bf16 %v468_v14, %v467_v13  ;;  %v3355_v12 = vld [vmem:[%s4137_s5 + $0x54] ss:$8 sps:$4 sm:$0xff]   ;;  %v3353_v13 = vld [vmem:[%s4137_s5 + $0x50] ss:$8 sps:$4 sm:$0xff]   ;;  %v3358_v14 = vld [vmem:[%s4137_s5 + $0x64] ss:$8 sps:$4 sm:$0xff]  }
  0xb8   : > { %v3632_v16 = vpop.trf.xlu0  ;;  %3182 = vmatprep.subr.bf16.mxu0 %v3495_v3 }
  0xb9   : > { %3193 = vmatpush3.bf16.msra.mxu1 %v3192_v15  ;;  %v469_v18 = vmul.f32 %v3632_v16, %v3632_v16  ;;  %v3356_v15 = vld [vmem:[%s4137_s5 + $0x60] ss:$8 sps:$4 sm:$0xff]  }
  0xba   : > { %3194 = vmatprep.subr.bf16.mxu1 %v3495_v3 }
  0xbc   : > { %v3636_v17 = vpop.trf.xlu0 }
  0xbd   : > { %v3183_v19 = vpack.c.bf16 %v3636_v17, %v3632_v16  ;;  %v470_v20 = vmul.f32 %v3636_v17, %v3636_v17 }
  0xbf   : > { %3184 = vmatpush3.bf16.msra.mxu0 %v3183_v19  ;;  %v3195_v21 = vpack.c.bf16 %v470_v20, %v469_v18  ;;  %v3361_v18 = vld [vmem:[%s4137_s5 + $0x74] ss:$8 sps:$4 sm:$0xff]   ;;  %v3499_v19 = vmov 0   ;;  %v3359_v20 = vld [vmem:[%s4137_s5 + $0x70] ss:$8 sps:$4 sm:$0xff]  }
  0xc0   : > { %v3644_v22 = vpop.trf.xlu0  ;;  %3185 = vmatprep.subr.bf16.mxu0 %v3495_v3  ;;  %350 = vst.msk [vmem:[#allocation2] sm:$0xff] %vm349_vm1, %v3499_v19  ;;  %351 = vst.msk [vmem:[#allocation2 + $0x28] sm:$0xff] %vm349_vm1, %v3499_v19 }
  0xc1   : > { %3196 = vmatpush3.bf16.msra.mxu1 %v3195_v21  ;;  %v471_v24 = vmul.f32 %v3644_v22, %v3644_v22  ;;  %352 = vst.msk [vmem:[#allocation3] sm:$0xff] %vm349_vm1, %v3499_v19  ;;  %353 = vst.msk [vmem:[#allocation3 + $0x28] sm:$0xff] %vm349_vm1, %v3499_v19  ;;  %v3364_v21 = vld [vmem:[%s4137_s5 + $0x4] ss:$8 sps:$4 sm:$0xff]  }
  0xc2   : > { %3197 = vmatprep.subr.bf16.mxu1 %v3495_v3 }
  0xc4   : > { %v3648_v23 = vpop.trf.xlu0 }
  0xc5   : > { %v3186_v25 = vpack.c.bf16 %v3648_v23, %v3644_v22  ;;  %v472_v26 = vmul.f32 %v3648_v23, %v3648_v23 }
  0xc7   : > { %3187 = vmatpush3.bf16.msra.mxu0 %v3186_v25  ;;  %v3198_v27 = vpack.c.bf16 %v472_v26, %v471_v24 }
  0xc8   : > { %v3656_v28 = vpop.trf.xlu0  ;;  %3188 = vmatprep.subr.bf16.mxu0 %v3495_v3 }
  0xc9   : > { %3199 = vmatpush3.bf16.msra.mxu1 %v3198_v27  ;;  %v473_v32 = vmul.f32 %v3656_v28, %v3656_v28 }
  0xca   : > { %3200 = vmatprep.subr.bf16.mxu1 %v3495_v3 }
  0xcc   : > { %v3660_v29 = vpop.trf.xlu0 }
  0xcd   : > { %v3189_v33 = vpack.c.bf16 %v3660_v29, %v3656_v28  ;;  %v474_v34 = vmul.f32 %v3660_v29, %v3660_v29 }
  0xcf   : > { %3190 = vmatpush3.bf16.msra.mxu0 %v3189_v33  ;;  %v3201_v35 = vpack.c.bf16 %v474_v34, %v473_v32 }
  0xd0   : > { %3203 = vmatprep.subr.bf16.mxu0 %v3495_v3 }
  0xd1   : > { %3202 = vmatpush3.bf16.msra.mxu1 %v3201_v35 }
  0xd2   : > { %2986 = vmatmul.mubr.msk.f32.vlgmr.msra.gmra.mrb[0].mxu0 %vm349_vm1, %v3498_v39  ;;  %3215 = vmatprep.subr.bf16.mxu1 %v3495_v3 }
  0xd3   : > { %3205 = vmatpush3.bf16.msra.mxu0 %v3204_v36  ;;  %3023 = vmatprep.mubr.msk.f32.mxu0 %vm3496_vm0, %v3497_v9 }
  0xd4   : > { %3005 = vmatmul.mubr.msk.f32.vlgmr.msra.gmra.mrb[0].mxu1 %vm349_vm1, %v3498_v39  ;;  %3206 = vmatprep.subr.bf16.mxu0 %v3495_v3 }
  0xd5   : > { %3217 = vmatpush3.bf16.msra.mxu1 %v3204_v36  ;;  %3042 = vmatprep.mubr.msk.f32.mxu1 %vm3496_vm0, %v3497_v9 }
  0xd6   : > { %3218 = vmatprep.subr.bf16.mxu1 %v3495_v3 }
  0xd7   : > { %3208 = vmatpush3.bf16.msra.mxu0 %v3207_v40 }
  0xd8   : > { %3209 = vmatprep.subr.bf16.mxu0 %v3495_v3 }
  0xd9   : > { %3220 = vmatpush3.bf16.msra.mxu1 %v3207_v40 }
  0xda   : > { %3221 = vmatprep.subr.bf16.mxu1 %v3495_v3 }
  0xdb   : > { %3211 = vmatpush3.bf16.msra.mxu0 %v3210_v43 }
  0xdc   : > { %3212 = vmatprep.subr.bf16.mxu0 %v3495_v3 }
  0xdd   : > { %3223 = vmatpush3.bf16.msra.mxu1 %v3210_v43 }
  0xde   : > { %3224 = vmatprep.subr.bf16.mxu1 %v3495_v3 }
  0xdf   : > { %3214 = vmatpush3.bf16.msra.mxu0 %v3213_v46 }
  0xe0   : > { %3227 = vmatprep.subr.bf16.mxu0 %v3495_v3 }
  0xe1   : > { %3226 = vmatpush3.bf16.msra.mxu1 %v3213_v46 }
  0xe2   : > { %3233 = vmatprep.subr.bf16.mxu1 %v3495_v3 }
 0x1a5   : > { %v463_v50 = vpop.f32.mrb[0].mxu0 }
 0x1a6   : > { %v2987_v51 = vpop.f32.mrb[1].mxu0  ;;  %3024 = vmatmul.mubr.msk.f32.vlgmr.msra.gmra.mrb[2].mxu0 %vm349_vm1, %v463_v50 }
 0x1a7   : > { %v541_v52 = vpop.f32.mrb[0].mxu1  ;;  %3229 = vmatpush3.bf16.msra.mxu0 %v3228_v49  ;;  %3053 = vmatprep.mubr.msk.f32.mxu0 %vm3496_vm0, %v3497_v9 }
 0x1a8   : > { %v3006_v53 = vpop.f32.mrb[1].mxu1  ;;  %3043 = vmatmul.mubr.msk.f32.vlgmr.msra.gmra.mrb[2].mxu1 %vm349_vm1, %v541_v52  ;;  %3230 = vmatprep.subr.bf16.mxu0 %v3495_v3 }
 0x1a9   : > { %3235 = vmatpush3.bf16.msra.mxu1 %v3228_v49  ;;  %3064 = vmatprep.mubr.msk.f32.mxu1 %vm3496_vm0, %v3497_v9  ;;  %v3350_v9 = vld [vmem:[%s4137_s5 + $0x40] ss:$8 sps:$4 sm:$0xff]  }
 0x1aa   : > { %3236 = vmatprep.subr.bf16.mxu1 %v3495_v3  ;;  %v856_v3 = vlaneseq }
 0x1ab   : > { %3232 = vmatpush3.bf16.msra.mxu0 %v3231_v56 }
 0x1ac   : > { %v857_v4 = vshrl.u32 %v856_v3, 7  ;;  %992 = vmatprep.subr.bf16.mxu0 %v3352_v8  ;;  %v3370_v3 = vld [vmem:[%s4137_s5 + $0x24] ss:$8 sps:$4 sm:$0xff]  }
 0x1ad   : > { %3238 = vmatpush3.bf16.msra.mxu1 %v3231_v56 }
 0x1ae   : > { %v1589_v6 = vsub.s32 1, %v857_v4  ;;  %v3772_v26 = vsub.s32 0, %v857_v4  ;;  %v3368_v4 = vld [vmem:[%s4137_s5 + $0x20] ss:$8 sps:$4 sm:$0xff]  }
 0x1b0   : > { %v3734_v7 = vrot.slane %v3731_v5, %v1589_v6 }
 0x279   : > { %v622_v57 = vpop.f32.mrb[2].mxu0 }
 0x27a   : > { %v626_v58 = vmul.f32 0.0078125, %v622_v57  ;;  %v3025_v59 = vpop.f32.mrb[3].mxu0 }
 0x27b   : > { %v696_v60 = vpop.f32.mrb[2].mxu1 }
 0x27c   : > { %v701_v61 = vmul.f32 %v626_v58, %v626_v58  ;;  %v700_v62 = vmul.f32 0.0078125, %v696_v60  ;;  %v3044_v63 = vpop.f32.mrb[3].mxu1  ;;  %3054 = vmatmul.mubr.msk.f32.vlgmr.msra.gmra.mrb[4].mxu0 %vm709_vm2, %v626_v58 }
 0x27d   : > { %993 = vmatpush1.bf16.msra.mxu0 %v3350_v9  ;;  %1024 = vmatprep.mubr.bf16.mxu0 %v3499_v19  ;;  %v3362_v63 = vld [vmem:[%s4137_s5] ss:$8 sps:$4 sm:$0xff]  }
 0x27e   : > { %v702_v0 = vsub.f32 %v700_v62, %v701_v61  ;;  %994 = vmatprep.subr.bf16.mxu0 %v3355_v12  ;;  %v3373_v12 = vld [vmem:[%s4137_s5 + $0x34] ss:$8 sps:$4 sm:$0xff]  }
 0x280   : > { %v703_v1 = vadd.f32 1e-05, %v702_v0  ;;  %v3367_v0 = vld [vmem:[%s4137_s5 + $0x14] ss:$8 sps:$4 sm:$0xff]  }
 0x281   : > { %995 = vmatpush1.bf16.msra.mxu0 %v3353_v13 }
 0x282   : > { %3418 = vrsqrt.f32 %v703_v1  ;;  %996 = vmatprep.subr.bf16.mxu0 %v3358_v14 }
 0x285   : > { %997 = vmatpush1.bf16.msra.mxu0 %v3356_v15 }
 0x286   : > { %998 = vmatprep.subr.bf16.mxu0 %v3361_v18  ;;  %v3371_v18 = vld [vmem:[%s4137_s5 + $0x30] ss:$8 sps:$4 sm:$0xff]  }
 0x289   : > { %999 = vmatpush1.bf16.msra.mxu0 %v3359_v20  ;;  %v3376_v20 = vld [vmem:[%s4137_s5 + $0x84] ss:$8 sps:$4 sm:$0xff]  }
 0x28a   : > { %1150 = vmatprep.subr.bf16.mxu0 %v3364_v21 }
 0x28c   : > { %v3419_v2 = vpop.eup %3418 }
 0x28d   : > { %3065 = vmatmul.mubr.msk.f32.vlgmr.msra.gmra.mrb[4].mxu1 %vm709_vm2, %v3419_v2  ;;  %v3365_v2 = vld [vmem:[%s4137_s5 + $0x10] ss:$8 sps:$4 sm:$0xff]  }
 0x34f   : > { %v779_v24 = vpop.f32.mrb[4].mxu0 }
 0x350   : > { %v3055_v25 = vpop.f32.mrb[5].mxu0  ;;  %v859_v27 = vrot.slane %v779_v24, %v3772_v26 }
 0x352   : > { %v860_v30 = vsub.f32 %v3622_v10, %v859_v27  ;;  %v861_v32 = vsub.f32 %v3624_v11, %v859_v27  ;;  %v862_v33 = vsub.f32 %v3632_v16, %v859_v27  ;;  %v863_v34 = vsub.f32 %v3636_v17, %v859_v27  ;;  %v2740_v10 = vld [vmem:[%s4135_s3] ss:$0 sm:$0xff] }
 0x353   : > { %v864_v37 = vsub.f32 %v3644_v22, %v859_v27  ;;  %v865_v38 = vsub.f32 %v3648_v23, %v859_v27  ;;  %v866_v39 = vsub.f32 %v3656_v28, %v859_v27  ;;  %v867_v40 = vsub.f32 %v3660_v29, %v859_v27  ;;  %v2741_v22 = vld [vmem:[%s4136_s4] ss:$0 sm:$0xff]  ;;  %v918_v27 = vld [vmem:[#allocation2] sm:$0x80] }
 0x360   : > { %v852_v31 = vpop.f32.mrb[4].mxu1 }
 0x361   : > { %v871_v35 = vrot.slane %v852_v31, %v3772_v26  ;;  %v3066_v36 = vpop.f32.mrb[5].mxu1  ;;  %v1067_v31 = vshrl.u32 %v918_v27, 16 }
 0x362   : > { %v3374_v36 = vld [vmem:[%s4137_s5 + $0x80] ss:$8 sps:$4 sm:$0xff]  }
 0x363   : > { %v872_v11 = vmul.f32 %v871_v35, %v860_v30  ;;  %v873_v41 = vmul.f32 %v871_v35, %v861_v32  ;;  %v874_v16 = vmul.f32 %v871_v35, %v862_v33  ;;  %v875_v42 = vmul.f32 %v871_v35, %v863_v34 }
 0x364   : > { %v876_v17 = vmul.f32 %v871_v35, %v864_v37  ;;  %v877_v43 = vmul.f32 %v871_v35, %v865_v38  ;;  %v878_v44 = vmul.f32 %v871_v35, %v866_v39  ;;  %v879_v45 = vmul.f32 %v871_v35, %v867_v40  ;;  %v3379_v37 = vld [vmem:[%s4137_s5 + $0x94] ss:$8 sps:$4 sm:$0xff]  }
 0x365   : > { %v887_v23 = vmul.f32 %v2740_v10, %v872_v11  ;;  %v888_v28 = vmul.f32 %v2740_v10, %v873_v41  ;;  %v889_v46 = vmul.f32 %v2740_v10, %v874_v16  ;;  %v890_v29 = vmul.f32 %v2740_v10, %v875_v42  ;;  %v3382_v11 = vld [vmem:[%s4137_s5 + $0xa4] ss:$8 sps:$4 sm:$0xff]   ;;  %v3380_v42 = vld [vmem:[%s4137_s5 + $0xa0] ss:$8 sps:$4 sm:$0xff]  }
 0x366   : > { %v891_v47 = vmul.f32 %v2740_v10, %v876_v17  ;;  %v892_v48 = vmul.f32 %v2740_v10, %v877_v43  ;;  %v893_v49 = vmul.f32 %v2740_v10, %v878_v44  ;;  %v894_v50 = vmul.f32 %v2740_v10, %v879_v45  ;;  %v3377_v10 = vld [vmem:[%s4137_s5 + $0x90] ss:$8 sps:$4 sm:$0xff]   ;;  %v3385_v17 = vld [vmem:[%s4137_s5 + $0xb4] ss:$8 sps:$4 sm:$0xff]  }
 0x367   : > { %v902_v51 = vadd.f32 %v2741_v22, %v887_v23  ;;  %v903_v52 = vadd.f32 %v2741_v22, %v888_v28  ;;  %v904_v53 = vadd.f32 %v2741_v22, %v889_v46  ;;  %v905_v54 = vadd.f32 %v2741_v22, %v890_v29  ;;  %v3388_v23 = vld [vmem:[%s4137_s5 + $0xc4] ss:$8 sps:$4 sm:$0xff]  }
 0x368   : > { %v906_v55 = vadd.f32 %v2741_v22, %v891_v47  ;;  %v907_v56 = vadd.f32 %v2741_v22, %v892_v48  ;;  %v908_v57 = vadd.f32 %v2741_v22, %v893_v49  ;;  %v909_v58 = vadd.f32 %v2741_v22, %v894_v50  ;;  %v3383_v22 = vld [vmem:[%s4137_s5 + $0xb0] ss:$8 sps:$4 sm:$0xff]  }
 0x369   : > { %v910_v59 = vpack.c.bf16 %v903_v52, %v902_v51  ;;  %v911_v60 = vpack.c.bf16 %v905_v54, %v904_v53  ;;  %v1069_v35 = vrot.slane %v1067_v31, 7  ;;  %v3386_v53 = vld [vmem:[%s4137_s5 + $0xc0] ss:$8 sps:$4 sm:$0xff]  }
 0x36a   : > { %v912_v61 = vpack.c.bf16 %v907_v56, %v906_v55  ;;  %v913_v62 = vpack.c.bf16 %v909_v58, %v908_v57  ;;  %v3391_v55 = vld [vmem:[%s4137_s5 + $0xd4] ss:$8 sps:$4 sm:$0xff]   ;;  %v3389_v57 = vld [vmem:[%s4137_s5 + $0xd0] ss:$8 sps:$4 sm:$0xff]   ;;  %v3394_v58 = vld [vmem:[%s4137_s5 + $0xe4] ss:$8 sps:$4 sm:$0xff]  }
 0x36b   : > { %914 = vst.msk [vmem:[#allocation2 + $0x8] sm:$0xff] %vm349_vm1, %v910_v59  ;;  %915 = vst.msk [vmem:[#allocation2 + $0x10] sm:$0xff] %vm349_vm1, %v911_v60 }
 0x36c   : > { %916 = vst.msk [vmem:[#allocation2 + $0x18] sm:$0xff] %vm349_vm1, %v912_v61  ;;  %917 = vst.msk [vmem:[#allocation2 + $0x20] sm:$0xff] %vm349_vm1, %v913_v62  ;;  %v3392_v61 = vld [vmem:[%s4137_s5 + $0xe0] ss:$8 sps:$4 sm:$0xff]   ;;  %v3397_v62 = vld [vmem:[%s4137_s5 + $0xf4] ss:$8 sps:$4 sm:$0xff]  }
 0x372   : > { %v3800_v1 = vld [vmem:[#allocation2 + $0x8] sm:$0xff]  ;;  %v3814_v6 = vld [vmem:[#allocation2 + $0x10] sm:$0xff] }
 0x373   : > { %2758 = vmatmul.mubr.msk.bf16.vlgmr.msra.gmra.mrb[8].mxu0 %vm349_vm1, %v3800_v1  ;;  %v3816_v8 = vld [vmem:[#allocation2 + $0x18] sm:$0xff]  ;;  %v3818_v9 = vld [vmem:[#allocation2 + $0x20] sm:$0xff]  ;;  %v1432_v13 = vrot.slane %v3814_v6, 1  ;;  %v1070_v25 = vshrl.u32 %v3800_v1, 16  ;;  %v1073_v32 = vshll.u32 %v3800_v1, 16  ;;  %v1077_v34 = vshrl.u32 %v3814_v6, 16 }
 0x374   : > { %1151 = vmatpush1.bf16.msra.mxu0 %v3362_v63  ;;  %1034 = vmatprep.mubr.bf16.mxu0 %v3499_v19  ;;  %v1434_v14 = vrot.slane %v3816_v8, 1  ;;  %v1436_v15 = vrot.slane %v3818_v9, 1  ;;  %v1080_v40 = vshll.u32 %v3814_v6, 16  ;;  %v1084_v16 = vshrl.u32 %v3816_v8, 16 }
 0x375   : > { %1152 = vmatprep.subr.bf16.mxu0 %v3367_v0  ;;  %v1072_v30 = vrot.slane %v1070_v25, 7  ;;  %v1079_v38 = vrot.slane %v1077_v34, 7  ;;  %v1087_v45 = vshll.u32 %v3816_v8, 16  ;;  %v1091_v46 = vshrl.u32 %v3818_v9, 16  ;;  %v3395_v0 = vld [vmem:[%s4137_s5 + $0xf0] ss:$8 sps:$4 sm:$0xff]  }
 0x376   : > { %v3838_v21 = vsel %vm1430_vm3, %v1432_v13, %v1434_v14  ;;  %v3843_v24 = vsel %vm1430_vm3, %v1434_v14, %v1436_v15  ;;  %v1086_v43 = vrot.slane %v1084_v16, 7  ;;  %v1094_v48 = vshll.u32 %v3818_v9, 16 }
 0x377   : > { %v1075_v33 = vor.u32 %v1073_v32, %v1072_v30  ;;  %v1082_v41 = vor.u32 %v1080_v40, %v1079_v38  ;;  %v1093_v29 = vrot.slane %v1091_v46, 7  ;;  %v1243_v51 = vrot.slane %v1073_v32, 1 }
 0x378   : > { %1153 = vmatpush1.bf16.msra.mxu0 %v3365_v2  ;;  %v1089_v28 = vor.u32 %v1087_v45, %v1086_v43  ;;  %v1248_v54 = vrot.slane %v1080_v40, 1  ;;  %v1256_v60 = vrot.slane %v1087_v45, 1  ;;  %v1264_v2 = vrot.slane %v1094_v48, 1 }
 0x379   : > { %1154 = vmatprep.subr.bf16.mxu0 %v3370_v3  ;;  %v1076_v39 = vsel %vm1065_vm4, %v1069_v35, %v1075_v33  ;;  %v1083_v44 = vsel %vm1065_vm4, %v1072_v30, %v1082_v41  ;;  %v1096_v49 = vor.u32 %v1094_v48, %v1093_v29  ;;  %v1244_v52 = vor.u32 %v1243_v51, %v1070_v25  ;;  %v1227_v3 = vld [vmem:[#allocation2 + $0x28] sm:$0x1] }
 0x37a   : > { %v1090_v47 = vsel %vm1065_vm4, %v1079_v38, %v1089_v28  ;;  %v1252_v59 = vor.u32 %v1248_v54, %v1077_v34  ;;  %v1260_v1 = vor.u32 %v1256_v60, %v1084_v16  ;;  %v1438_v30 = vrot.slane %v1227_v3, 1 }
 0x37b   : > { %2759 = vmatmul.mubr.msk.bf16.gmra.mrb[12].mxu0 %vm349_vm1, %v3814_v6  ;;  %v1097_v50 = vsel %vm1065_vm4, %v1086_v43, %v1096_v49  ;;  %v1249_v56 = vsel %vm1237_vm5, %v1244_v52, %v1248_v54 }
 0x37c   : > { %1044 = vmatprep.mubr.bf16.mxu0 %v3499_v19  ;;  %1155 = vmatpush1.bf16.msra.mxu0 %v3368_v4  ;;  %v1257_v63 = vsel %vm1237_vm5, %v1252_v59, %v1256_v60  ;;  %v1265_v4 = vsel %vm1237_vm5, %v1260_v1, %v1264_v2  ;;  %v1439_v6 = vsel %vm1430_vm3, %v1436_v15, %v1438_v30 }
 0x37d   : > { %1156 = vmatprep.subr.bf16.mxu0 %v3373_v12  ;;  %v1268_v12 = vor.u32 %v1264_v2, %v1091_v46 }
 0x380   : > { %1157 = vmatpush1.bf16.msra.mxu0 %v3371_v18 }
 0x381   : > { %1326 = vmatprep.subr.bf16.mxu0 %v3376_v20  ;;  %v1415_v20 = vld [vmem:[#allocation2 + $0x8] sm:$0xfe] }
 0x382   : > { %v1431_v25 = vrot.slane %v1415_v20, 1 }
 0x383   : > { %2760 = vmatmul.mubr.msk.bf16.gmra.mrb[16].mxu0 %vm349_vm1, %v3816_v8  ;;  %v1270_v8 = vshll.u32 %v1227_v3, 16 }
 0x384   : > { %1054 = vmatprep.mubr.bf16.mxu0 %v3499_v19  ;;  %v1433_v27 = vsel %vm1430_vm3, %v1431_v25, %v1432_v13  ;;  %v1586_v13 = vrot.slane %v3731_v5, %v3772_v26 }
 0x385   : > { %v1272_v14 = vrot.slane %v1270_v8, 1 }
 0x387   : > { %v1273_v18 = vsel %vm1237_vm5, %v1268_v12, %v1272_v14 }
 0x38b   : > { %2761 = vmatmul.mubr.msk.bf16.gmra.mrb[20].mxu0 %vm349_vm1, %v3818_v9 }
 0x38c   : > { %1182 = vmatprep.mubr.bf16.mxu0 %v3499_v19 }
 0x393   : > { %2770 = vmatmul.mubr.msk.bf16.vlgmr.msra.gmra.mrb[8].mxu0 %vm349_vm1, %v1076_v39 }
 0x394   : > { %1327 = vmatpush1.bf16.msra.mxu0 %v3374_v36  ;;  %1192 = vmatprep.mubr.bf16.mxu0 %v3499_v19 }
 0x395   : > { %1328 = vmatprep.subr.bf16.mxu0 %v3379_v37 }
 0x398   : > { %1329 = vmatpush1.bf16.msra.mxu0 %v3377_v10 }
 0x399   : > { %1330 = vmatprep.subr.bf16.mxu0 %v3382_v11 }
 0x39b   : > { %2771 = vmatmul.mubr.msk.bf16.gmra.mrb[12].mxu0 %vm349_vm1, %v1083_v44 }
 0x39c   : > { %1202 = vmatprep.mubr.bf16.mxu0 %v3499_v19  ;;  %1331 = vmatpush1.bf16.msra.mxu0 %v3380_v42 }
 0x39d   : > { %1332 = vmatprep.subr.bf16.mxu0 %v3385_v17 }
 0x3a0   : > { %1333 = vmatpush1.bf16.msra.mxu0 %v3383_v22 }
 0x3a1   : > { %1492 = vmatprep.subr.bf16.mxu0 %v3388_v23 }
 0x3a3   : > { %2772 = vmatmul.mubr.msk.bf16.gmra.mrb[16].mxu0 %vm349_vm1, %v1090_v47 }
 0x3a4   : > { %1212 = vmatprep.mubr.bf16.mxu0 %v3499_v19 }
 0x3ab   : > { %2773 = vmatmul.mubr.msk.bf16.gmra.mrb[20].mxu0 %vm349_vm1, %v1097_v50 }
 0x3ac   : > { %1358 = vmatprep.mubr.bf16.mxu0 %v3499_v19 }
 0x3b3   : > { %2790 = vmatmul.mubr.msk.bf16.vlgmr.msra.gmra.mrb[8].mxu0 %vm349_vm1, %v1249_v56 }
 0x3b4   : > { %1493 = vmatpush1.bf16.msra.mxu0 %v3386_v53  ;;  %1368 = vmatprep.mubr.bf16.mxu0 %v3499_v19 }
 0x3b5   : > { %1494 = vmatprep.subr.bf16.mxu0 %v3391_v55 }
 0x3b8   : > { %1495 = vmatpush1.bf16.msra.mxu0 %v3389_v57 }
 0x3b9   : > { %1496 = vmatprep.subr.bf16.mxu0 %v3394_v58 }
 0x3bb   : > { %2791 = vmatmul.mubr.msk.bf16.gmra.mrb[12].mxu0 %vm349_vm1, %v1257_v63 }
 0x3bc   : > { %1378 = vmatprep.mubr.bf16.mxu0 %v3499_v19  ;;  %1497 = vmatpush1.bf16.msra.mxu0 %v3392_v61 }
 0x3bd   : > { %1498 = vmatprep.subr.bf16.mxu0 %v3397_v62 }
 0x3c0   : > { %1499 = vmatpush1.bf16.msra.mxu0 %v3395_v0 }
 0x3c3   : > { %2792 = vmatmul.mubr.msk.bf16.gmra.mrb[16].mxu0 %vm349_vm1, %v1265_v4 }
 0x3c4   : > { %1388 = vmatprep.mubr.bf16.mxu0 %v3499_v19 }
 0x3cb   : > { %2793 = vmatmul.mubr.msk.bf16.gmra.mrb[20].mxu0 %vm349_vm1, %v1273_v18 }
 0x3cc   : > { %1524 = vmatprep.mubr.bf16.mxu0 %v3499_v19 }
 0x3d3   : > { %2810 = vmatmul.mubr.msk.bf16.vlgmr.msra.gmra.mrb[8].mxu0 %vm349_vm1, %v1433_v27 }
 0x3d4   : > { %1534 = vmatprep.mubr.bf16.mxu0 %v3499_v19 }
 0x3db   : > { %2811 = vmatmul.mubr.msk.bf16.gmra.mrb[12].mxu0 %vm349_vm1, %v3838_v21 }
 0x3dc   : > { %1544 = vmatprep.mubr.bf16.mxu0 %v3499_v19 }
 0x3e3   : > { %2812 = vmatmul.mubr.msk.bf16.gmra.mrb[16].mxu0 %vm349_vm1, %v3843_v24 }
 0x3e4   : > { %1554 = vmatprep.mubr.bf16.mxu0 %v3499_v19 }
 0x3eb   : > { %2813 = vmatmul.mubr.msk.bf16.gmra.mrb[20].mxu0 %vm349_vm1, %v1439_v6 }
 0x4a6   : > { %v1526_v31 = vpop.f32.mrb[8].mxu0 }
 0x4a7   : > { %v1593_v32 = vadd.f32 %v1586_v13, %v1526_v31  ;;  %v1528_v21 = vpop.f32.mrb[9].mxu0 }
 0x4a8   : > { %v1594_v33 = vadd.f32 %v3734_v7, %v1528_v21  ;;  %v1530_v34 = vpop.f32.mrb[10].mxu0 }
 0x4a9   : > { %v1595_v35 = vadd.f32 %v1586_v13, %v1530_v34  ;;  %v1532_v24 = vpop.f32.mrb[11].mxu0  ;;  %v1609_v36 = vmul.f32 0.35355338, %v1593_v32 }
 0x4aa   : > { %v1596_v19 = vadd.f32 %v3734_v7, %v1532_v24 }
 0x4ab   : > { %v1610_v37 = vmul.f32 0.35355338, %v1595_v35 }
 0x4ac   : > { %v3947_v9 = vpack.c.bf16 %v1596_v19, %v1594_v33 }
 0x4ad   : > { %v1617_v15 = vpack.c.bf16 %v1610_v37, %v1609_v36 }
 0x4ae   : > { %v1536_v38 = vpop.f32.mrb[12].mxu0 }
 0x4af   : > { %v1597_v39 = vadd.f32 %v1586_v13, %v1536_v38  ;;  %1629 = vrot.lane.b32.xlu1 %v1617_v15, %s3500_s21  ;;  %v1538_v5 = vpop.f32.mrb[13].mxu0  ;;  %3075 = vmatprep.mubr.msk.bf16.mxu1 %vm349_vm1, %v1617_v15 }
 0x4b0   : > { %v1598_v26 = vadd.f32 %v3734_v7, %v1538_v5  ;;  %v1540_v40 = vpop.f32.mrb[14].mxu0 }
 0x4b1   : > { %v1599_v10 = vadd.f32 %v1586_v13, %v1540_v40  ;;  %v1542_v11 = vpop.f32.mrb[15].mxu0  ;;  %v1611_v16 = vmul.f32 0.35355338, %v1597_v39 }
 0x4b2   : > { %v1600_v41 = vadd.f32 %v3734_v7, %v1542_v11 }
 0x4b3   : > { %v1612_v42 = vmul.f32 0.35355338, %v1599_v10 }
 0x4b4   : > { %v1622_v17 = vpack.c.bf16 %v1600_v41, %v1598_v26 }
 0x4b5   : > { %v1618_v43 = vpack.c.bf16 %v1612_v42, %v1611_v16 }
 0x4b6   : > { %v1546_v44 = vpop.f32.mrb[16].mxu0 }
 0x4b7   : > { %v1601_v45 = vadd.f32 %v1586_v13, %v1546_v44  ;;  %1631 = vrot.lane.b32.xlu1 %v1618_v43, %s3500_s21  ;;  %v1548_v22 = vpop.f32.mrb[17].mxu0 }
 0x4b8   : > { %v1602_v23 = vadd.f32 %v3734_v7, %v1548_v22  ;;  %v1550_v28 = vpop.f32.mrb[18].mxu0 }
 0x4b9   : > { %v1603_v46 = vadd.f32 %v1586_v13, %v1550_v28  ;;  %v1552_v29 = vpop.f32.mrb[19].mxu0  ;;  %v1613_v48 = vmul.f32 0.35355338, %v1601_v45 }
 0x4ba   : > { %v1604_v47 = vadd.f32 %v3734_v7, %v1552_v29 }
 0x4bb   : > { %v1614_v49 = vmul.f32 0.35355338, %v1603_v46 }
 0x4bc   : > { %v1623_v50 = vpack.c.bf16 %v1604_v47, %v1602_v23 }
 0x4bd   : > { %v1619_v51 = vpack.c.bf16 %v1614_v49, %v1613_v48 }
 0x4be   : > { %v1556_v52 = vpop.f32.mrb[20].mxu0 }
 0x4bf   : > { %v1605_v53 = vadd.f32 %v1586_v13, %v1556_v52  ;;  %1633 = vrot.lane.b32.xlu1 %v1619_v51, %s3500_s21  ;;  %v1558_v54 = vpop.f32.mrb[21].mxu0 }
 0x4c0   : > { %v1606_v55 = vadd.f32 %v3734_v7, %v1558_v54  ;;  %v1560_v56 = vpop.f32.mrb[22].mxu0 }
 0x4c1   : > { %v1607_v57 = vadd.f32 %v1586_v13, %v1560_v56  ;;  %v1562_v58 = vpop.f32.mrb[23].mxu0  ;;  %v1615_v60 = vmul.f32 0.35355338, %v1605_v53 }
 0x4c2   : > { %v1608_v59 = vadd.f32 %v3734_v7, %v1562_v58 }
 0x4c3   : > { %v1616_v61 = vmul.f32 0.35355338, %v1607_v57 }
 0x4c4   : > { %v1624_v62 = vpack.c.bf16 %v1608_v59, %v1606_v55 }
 0x4c5   : > { %v1620_v63 = vpack.c.bf16 %v1616_v61, %v1615_v60 }
 0x4c7   : > { %1635 = vrot.lane.b32.xlu1 %v1620_v63, %s3500_s21 }
 0x521   : > { %v1630_v0 = vpop.permute.xlu1 %1629 }
 0x522   : > { %v1650_v1 = vsel %vm349_vm1, %v1630_v0, 0  ;;  %3319 = vmatprep.subr.msk.bf16.mxu1 %vm349_vm1, %v1630_v0 }
 0x523   : > { %3068 = vmatpush3.bf16.xpose.msra.mxu1 %v1650_v1 }
 0x529   : > { %v1632_v2 = vpop.permute.xlu1 %1631 }
 0x52a   : > { %v1653_v3 = vsel %vm349_vm1, %v1632_v2, 0  ;;  %3320 = vmatprep.subr.msk.bf16.mxu1 %vm349_vm1, %v1632_v2 }
 0x52b   : > { %3070 = vmatpush3.bf16.xpose.msra.mxu1 %v1653_v3 }
 0x531   : > { %v1634_v4 = vpop.permute.xlu1 %1633 }
 0x532   : > { %v1656_v7 = vsel %vm349_vm1, %v1634_v4, 0  ;;  %3321 = vmatprep.subr.msk.bf16.mxu1 %vm349_vm1, %v1634_v4  ;;  %v3398_v4 = vld [vmem:[#allocation4 + $0x20] sm:$0xff]  }
 0x533   : > { %3072 = vmatpush3.bf16.xpose.msra.mxu1 %v1656_v7  ;;  %v3399_v7 = vld [vmem:[#allocation4 + $0x28] sm:$0xff]  }
 0x539   : > { %v1636_v8 = vpop.permute.xlu1 %1635 }
 0x53a   : > { %v1659_v12 = vsel %vm349_vm1, %v1636_v8, 0  ;;  %3322 = vmatprep.subr.msk.bf16.mxu1 %vm349_vm1, %v1636_v8  ;;  %v3400_v8 = vld [vmem:[#allocation4 + $0x30] sm:$0xff]  }
 0x53b   : > { %3074 = vmatpush3.bf16.xpose.msra.mxu1 %v1659_v12  ;;  %v3401_v12 = vld [vmem:[#allocation4 + $0x38] sm:$0xff]  }
 0x53c   : > { %3083 = vmatprep.subr.bf16.mxu1 %v3947_v9 }
 0x542   : > { %3076 = vmatmul.mubr.msk.bf16.vlgmr.msra.gmra.mrb[8].mxu1 %vm349_vm1, %v1618_v43 }
 0x543   : > { %3079 = vmatprep.mubr.msk.bf16.mxu1 %vm349_vm1, %v1619_v51  ;;  %3084 = vmatpush3.bf16.msra.mxu1 %v3947_v9 }
 0x544   : > { %3085 = vmatprep.subr.bf16.mxu1 %v1622_v17 }
 0x547   : > { %3086 = vmatpush3.bf16.msra.mxu1 %v1622_v17 }
 0x548   : > { %3087 = vmatprep.subr.bf16.mxu1 %v1623_v50 }
 0x54a   : > { %3080 = vmatmul.mubr.msk.bf16.gmra.mrb[12].mxu1 %vm349_vm1, %v1620_v63 }
 0x54b   : > { %3088 = vmatpush3.bf16.msra.mxu1 %v1623_v50 }
 0x54c   : > { %3089 = vmatprep.subr.bf16.mxu1 %v1624_v62 }
 0x54f   : > { %3090 = vmatpush3.bf16.msra.mxu1 %v1624_v62 }
 0x550   : > { %3099 = vmatprep.subr.bf16.mxu1 %v3398_v4 }
 0x615   : > { %v3077_v14 = vpop.f32.mrb[8].mxu1 }
 0x616   : > { %v1695_v18 = vpop.f32.mrb[9].mxu1  ;;  %v1732_v6 = vsel %vm349_vm1, %v3077_v14, -inf }
 0x617   : > { %v3078_v20 = vpop.f32.mrb[10].mxu1  ;;  %v1726_v25 = vsel %vm349_vm1, %v1695_v18, -inf }
 0x618   : > { %1727 = vmax.xlane.f32.xlu1 %v1726_v25  ;;  %v1698_v27 = vpop.f32.mrb[11].mxu1  ;;  %v1735_v21 = vsel %vm349_vm1, %v3078_v20, -inf }
 0x619   : > { %v1729_v30 = vsel %vm349_vm1, %v1698_v27, -inf }
 0x61a   : > { %1730 = vmax.xlane.f32.xlu0 %v1729_v30 }
 0x61c   : > { %1733 = vmax.xlane.f32.xlu1 %v1732_v6 }
 0x61d   : > { %v3081_v13 = vpop.f32.mrb[12].mxu1 }
 0x61e   : > { %v1711_v31 = vpop.f32.mrb[13].mxu1  ;;  %v1744_v34 = vsel %vm349_vm1, %v3081_v13, -inf }
 0x61f   : > { %v3082_v32 = vpop.f32.mrb[14].mxu1  ;;  %v1738_v35 = vsel %vm349_vm1, %v1711_v31, -inf }
 0x620   : > { %1736 = vmax.xlane.f32.xlu1 %v1735_v21  ;;  %v1714_v33 = vpop.f32.mrb[15].mxu1  ;;  %v1747_v19 = vsel %vm349_vm1, %v3082_v32, -inf }
 0x621   : > { %v1741_v24 = vsel %vm349_vm1, %v1714_v33, -inf }
 0x624   : > { %1745 = vmax.xlane.f32.xlu1 %v1744_v34 }
 0x628   : > { %1739 = vmax.xlane.f32.xlu1 %v1738_v35 }
 0x62c   : > { %1742 = vmax.xlane.f32.xlu1 %v1741_v24 }
 0x630   : > { %1748 = vmax.xlane.f32.xlu1 %v1747_v19 }
 0x6a5   : > { %v1728_v36 = vpop.xlane.xlu1 %1727 }
 0x6a6   : > { %v1750_v37 = vsub.f32 %v1695_v18, %v1728_v36 }
 0x6a7   : > { %v1731_v9 = vpop.xlane.xlu0 %1730 }
 0x6a8   : > { %v1758_v15 = vmul.f32 1.442695, %v1750_v37  ;;  %v1751_v38 = vsub.f32 %v1698_v27, %v1731_v9 }
 0x6a9   : > { %v1734_v39 = vpop.xlane.xlu1 %1733 }
 0x6aa   : > { %3420 = vpow2.f32 %v1758_v15  ;;  %v1760_v5 = vmul.f32 1.442695, %v1751_v38  ;;  %v1752_v26 = vsub.f32 %v3077_v14, %v1734_v39  ;;  %v3993_v14 = vld [vmem:[#allocation4] sm:$0xff]  }
 0x6ac   : > { %3422 = vpow2.f32 %v1760_v5  ;;  %v1762_v40 = vmul.f32 1.442695, %v1752_v26  ;;  %v3998_v26 = vld [vmem:[#allocation3] sm:$0x80] }
 0x6ad   : > { %v1737_v10 = vpop.xlane.xlu1 %1736 }
 0x6ae   : > { %3424 = vpow2.f32 %v1762_v40  ;;  %v1753_v11 = vsub.f32 %v3078_v20, %v1737_v10  ;;  %v1927_v40 = vshrl.u32 %v3998_v26, 16 }
 0x6b0   : > { %v1764_v41 = vmul.f32 1.442695, %v1753_v11 }
 0x6b1   : > { %v1746_v16 = vpop.xlane.xlu1 %1745 }
 0x6b2   : > { %3426 = vpow2.f32 %v1764_v41  ;;  %v1756_v17 = vsub.f32 %v3081_v13, %v1746_v16 }
 0x6b4   : > { %v3421_v42 = vpop.eup %3420  ;;  %v1770_v29 = vmul.f32 1.442695, %v1756_v17 }
 0x6b5   : > { %v1740_v43 = vpop.xlane.xlu1 %1739  ;;  %v1774_v44 = vsel %vm349_vm1, %v3421_v42, 0.0 }
 0x6b6   : > { %v3423_v45 = vpop.eup %3422  ;;  %v1754_v22 = vsub.f32 %v1711_v31, %v1740_v43  ;;  %1775 = vadd.xlane.f32.xlu1 %v1774_v44 }
 0x6b7   : > { %v1777_v23 = vsel %vm349_vm1, %v3423_v45, 0.0  ;;  %v1806_v28 = vpack.c.bf16 %v3423_v45, %v3421_v42 }
 0x6b8   : > { %v3425_v46 = vpop.eup %3424  ;;  %v1766_v47 = vmul.f32 1.442695, %v1754_v22  ;;  %1778 = vadd.xlane.f32.xlu0 %v1777_v23 }
 0x6b9   : > { %3091 = vmatprep.mubr.msk.bf16.mxu1 %vm349_vm1, %v1806_v28  ;;  %v1743_v48 = vpop.xlane.xlu1 %1742  ;;  %v1780_v49 = vsel %vm349_vm1, %v3425_v46, 0.0 }
 0x6ba   : > { %3428 = vpow2.f32 %v1766_v47  ;;  %v1755_v50 = vsub.f32 %v1714_v33, %v1743_v48  ;;  %1781 = vadd.xlane.f32.xlu1 %v1780_v49 }
 0x6bb   : > { %3430 = vpow2.f32 %v1770_v29 }
 0x6bc   : > { %v3427_v51 = vpop.eup %3426  ;;  %v1768_v52 = vmul.f32 1.442695, %v1755_v50 }
 0x6bd   : > { %v1807_v53 = vpack.c.bf16 %v3427_v51, %v3425_v46  ;;  %v1749_v54 = vpop.xlane.xlu1 %1748  ;;  %v1783_v55 = vsel %vm349_vm1, %v3427_v51, 0.0  ;;  %v1929_v46 = vrot.slane %v1927_v40, 7 }
 0x6be   : > { %3432 = vpow2.f32 %v1768_v52  ;;  %v1757_v56 = vsub.f32 %v3082_v32, %v1749_v54  ;;  %1784 = vadd.xlane.f32.xlu0 %v1783_v55 }
 0x6bf   : > { %3092 = vmatmul.mubr.msk.bf16.vlgmr.msra.gmra.mrb[16].mxu1 %vm349_vm1, %v1807_v53 }
 0x6c0   : > { %v1772_v57 = vmul.f32 1.442695, %v1757_v56  ;;  %3100 = vmatpush3.bf16.msra.mxu1 %v3398_v4 }
 0x6c1   : > { %3101 = vmatprep.subr.bf16.mxu1 %v3399_v7 }
 0x6c2   : > { %3434 = vpow2.f32 %v1772_v57 }
 0x6c4   : > { %v3429_v58 = vpop.eup %3428  ;;  %3102 = vmatpush3.bf16.msra.mxu1 %v3399_v7 }
 0x6c5   : > { %v1786_v59 = vsel %vm349_vm1, %v3429_v58, 0.0  ;;  %v3431_v60 = vpop.eup %3430  ;;  %3103 = vmatprep.subr.bf16.mxu1 %v3400_v8 }
 0x6c6   : > { %1787 = vadd.xlane.f32.xlu1 %v1786_v59  ;;  %v1792_v62 = vsel %vm349_vm1, %v3431_v60, 0.0  ;;  %v3403_v59 = vld [vmem:[#allocation4 + $0x8] sm:$0xff]  }
 0x6c8   : > { %v3433_v61 = vpop.eup %3432  ;;  %3104 = vmatpush3.bf16.msra.mxu1 %v3400_v8 }
 0x6c9   : > { %v1789_v63 = vsel %vm349_vm1, %v3433_v61, 0.0  ;;  %v1808_v0 = vpack.c.bf16 %v3433_v61, %v3429_v58  ;;  %3105 = vmatprep.subr.bf16.mxu1 %v3401_v12  ;;  %v3404_v61 = vld [vmem:[#allocation4 + $0x10] sm:$0xff]  }
 0x6ca   : > { %1793 = vadd.xlane.f32.xlu1 %v1792_v62  ;;  %1790 = vadd.xlane.f32.xlu0 %v1789_v63  ;;  %v3405_v63 = vld [vmem:[#allocation4 + $0x18] sm:$0xff]  }
 0x6cb   : > { %3095 = vmatprep.mubr.msk.bf16.mxu1 %vm349_vm1, %v1808_v0 }
 0x6cc   : > { %v3435_v1 = vpop.eup %3434  ;;  %3106 = vmatpush3.bf16.msra.mxu1 %v3401_v12  ;;  %v3406_v12 = vld [vmem:[#allocation4 + $0x40] sm:$0xff]  }
 0x6cd   : > { %v1795_v2 = vsel %vm349_vm1, %v3435_v1, 0.0  ;;  %v1809_v3 = vpack.c.bf16 %v3435_v1, %v3431_v60  ;;  %3115 = vmatprep.subr.bf16.mxu1 %v3993_v14 }
 0x6ce   : > { %1796 = vadd.xlane.f32.xlu0 %v1795_v2 }
 0x6cf   : > { %3096 = vmatmul.mubr.msk.bf16.gmra.mrb[20].mxu1 %vm349_vm1, %v1809_v3 }
 0x743   : > { %v1776_v18 = vpop.xlane.xlu1 %1775 }
 0x744   : > { %3436 = vrcp.f32 %v1776_v18 }
 0x745   : > { %v1779_v20 = vpop.xlane.xlu0 %1778 }
 0x747   : > { %v1782_v25 = vpop.xlane.xlu1 %1781 }
 0x748   : > { %3438 = vrcp.f32 %v1782_v25 }
 0x74b   : > { %v1785_v27 = vpop.xlane.xlu0 %1784 }
 0x74c   : > { %3440 = vrcp.f32 %v1785_v27 }
 0x74d   : > { %3442 = vrcp.f32 %v1779_v20  ;;  %v2069_v20 = vrot.slane %v3998_v26, 7  ;;  %v3413_v26 = vld [vmem:[#allocation4 + $0x78] sm:$0xff]  }
 0x74e   : > { %v3437_v13 = vpop.eup %3436 }
 0x752   : > { %v3439_v32 = vpop.eup %3438 }
 0x753   : > { %v1788_v30 = vpop.xlane.xlu1 %1787 }
 0x754   : > { %3444 = vrcp.f32 %v1788_v30 }
 0x756   : > { %v3441_v33 = vpop.eup %3440 }
 0x757   : > { %v1791_v6 = vpop.xlane.xlu0 %1790  ;;  %v3443_v35 = vpop.eup %3442 }
 0x758   : > { %v1794_v37 = vpop.xlane.xlu1 %1793 }
 0x759   : > { %3446 = vrcp.f32 %v1794_v37  ;;  %v3410_v37 = vld [vmem:[#allocation4 + $0x60] sm:$0xff]  }
 0x75b   : > { %v1797_v38 = vpop.xlane.xlu0 %1796 }
 0x75c   : > { %3448 = vrcp.f32 %v1797_v38  ;;  %v3412_v38 = vld [vmem:[#allocation4 + $0x70] sm:$0xff]  }
 0x75d   : > { %3450 = vrcp.f32 %v1791_v6 }
 0x75e   : > { %v3445_v16 = vpop.eup %3444 }
 0x763   : > { %v3447_v43 = vpop.eup %3446 }
 0x766   : > { %v3449_v23 = vpop.eup %3448 }
 0x767   : > { %v3451_v48 = vpop.eup %3450 }
 0x792   : > { %v3093_v31 = vpop.f32.mrb[16].mxu1 }
 0x793   : > { %v1856_v21 = vpop.f32.mrb[17].mxu1  ;;  %v1889_v24 = vmul.f32 %v3439_v32, %v3093_v31  ;;  %v3407_v32 = vld [vmem:[#allocation4 + $0x48] sm:$0xff]  }
 0x794   : > { %v3094_v34 = vpop.f32.mrb[18].mxu1  ;;  %v1887_v9 = vmul.f32 %v3437_v13, %v1856_v21 }
 0x795   : > { %v1890_v19 = vmul.f32 %v3441_v33, %v3094_v34  ;;  %v1859_v36 = vpop.f32.mrb[19].mxu1 }
 0x796   : > { %v1888_v15 = vmul.f32 %v3443_v35, %v1859_v36  ;;  %v3408_v35 = vld [vmem:[#allocation4 + $0x50] sm:$0xff]  }
 0x797   : > { %v1896_v39 = vpack.c.bf16 %v1890_v19, %v1889_v24  ;;  %v3409_v19 = vld [vmem:[#allocation4 + $0x58] sm:$0xff]  }
 0x798   : > { %v1895_v5 = vpack.c.bf16 %v1888_v15, %v1887_v9  ;;  %v3411_v9 = vld [vmem:[#allocation4 + $0x68] sm:$0xff]  }
 0x799   : > { %1900 = vst.msk [vmem:[#allocation3 + $0x10] sm:$0xff] %vm349_vm1, %v1896_v39 }
 0x79a   : > { %1899 = vst.msk [vmem:[#allocation3 + $0x8] sm:$0xff] %vm349_vm1, %v1895_v5 }
 0x7a0   : > { %v4001_v10 = vld [vmem:[#allocation3 + $0x10] sm:$0xff] }
 0x7a1   : > { %v4003_v11 = vld [vmem:[#allocation3 + $0x8] sm:$0xff]  ;;  %v1939_v41 = vshrl.u32 %v4001_v10, 16  ;;  %v1942_v22 = vshll.u32 %v4001_v10, 16  ;;  %v2072_v13 = vrot.slane %v4001_v10, 7 }
 0x7a2   : > { %v3097_v42 = vpop.f32.mrb[20].mxu1  ;;  %v1931_v17 = vshrl.u32 %v4003_v11, 16  ;;  %v1934_v47 = vshll.u32 %v4003_v11, 16  ;;  %v2070_v25 = vrot.slane %v4003_v11, 7 }
 0x7a3   : > { %v1872_v44 = vpop.f32.mrb[21].mxu1  ;;  %v1941_v45 = vrot.slane %v1939_v41, 7  ;;  %v1893_v49 = vmul.f32 %v3447_v43, %v3097_v42  ;;  %v2317_v5 = vrot.slane %v1942_v22, 1  ;;  %v3414_v42 = vld [vmem:[#allocation4 + $0x80] sm:$0xff]  }
 0x7a4   : > { %v3098_v28 = vpop.f32.mrb[22].mxu1  ;;  %v1933_v29 = vrot.slane %v1931_v17, 7  ;;  %v1891_v53 = vmul.f32 %v3445_v16, %v1872_v44  ;;  %v2071_v6 = vsel %vm2068_vm6, %v2069_v20, %v2070_v25  ;;  %v2073_v21 = vsel %vm2068_vm6, %v2070_v25, %v2072_v13  ;;  %v3415_v44 = vld [vmem:[#allocation4 + $0x88] sm:$0xff]   ;;  %v2600_v25 = vld [vmem:[%s3606_s11] sm:$0xff] }
 0x7a5   : > { %v1894_v50 = vmul.f32 %v3449_v23, %v3098_v28  ;;  %v1875_v51 = vpop.f32.mrb[23].mxu1  ;;  %v1944_v52 = vor.u32 %v1942_v22, %v1941_v45  ;;  %v2312_v15 = vrot.slane %v1934_v47, 1 }
 0x7a6   : > { %v1892_v54 = vmul.f32 %v3451_v48, %v1875_v51  ;;  %v1936_v55 = vor.u32 %v1934_v47, %v1933_v29 }
 0x7a7   : > { %v1898_v56 = vpack.c.bf16 %v1894_v50, %v1893_v49  ;;  %v1945_v60 = vsel %vm1065_vm4, %v1933_v29, %v1944_v52  ;;  %v2313_v39 = vor.u32 %v2312_v15, %v1931_v17  ;;  %v2321_v17 = vor.u32 %v2317_v5, %v1939_v41  ;;  %v3416_v41 = vld [vmem:[#allocation4 + $0x90] sm:$0xff]   ;;  %v3417_v50 = vld [vmem:[#allocation4 + $0x98] sm:$0xff]  }
 0x7a8   : > { %v1897_v57 = vpack.c.bf16 %v1892_v54, %v1891_v53  ;;  %v1937_v58 = vsel %vm1065_vm4, %v1929_v46, %v1936_v55  ;;  %v2452_v46 = vld [vmem:[#allocation3 + $0x8] sm:$0xfe]  ;;  %v2468_v49 = vrot.slane %v4001_v10, 1 }
 0x7a9   : > { %1902 = vst.msk [vmem:[#allocation3 + $0x20] sm:$0xff] %vm349_vm1, %v1898_v56  ;;  %3107 = vmatprep.mubr.msk.bf16.mxu1 %vm349_vm1, %v1937_v58  ;;  %v2318_v40 = vsel %vm1237_vm5, %v2313_v39, %v2317_v5  ;;  %v2467_v48 = vrot.slane %v2452_v46, 1  ;;  %v2862_v58 = vld [vmem:[%s4140_s8] ss:$0 sm:$0xff]  ;;  %v2606_v39 = vld [vmem:[%s3606_s11 + $0x30] sm:$0xff] }
 0x7aa   : > { %1901 = vst.msk [vmem:[#allocation3 + $0x18] sm:$0xff] %vm349_vm1, %v1897_v57  ;;  %3108 = vmatmul.mubr.msk.bf16.vlgmr.msra.gmra.mrb[24].mxu1 %vm349_vm1, %v1945_v60 }
 0x7ab   : > { %3116 = vmatpush3.bf16.msra.mxu1 %v3993_v14  ;;  %v2469_v52 = vsel %vm1430_vm3, %v2467_v48, %v2468_v49 }
 0x7ac   : > { %3117 = vmatprep.subr.bf16.mxu1 %v3403_v59 }
 0x7af   : > { %3118 = vmatpush3.bf16.msra.mxu1 %v3403_v59 }
 0x7b0   : > { %3119 = vmatprep.subr.bf16.mxu1 %v3404_v61  ;;  %v4024_v62 = vld [vmem:[#allocation3 + $0x20] sm:$0xff] }
 0x7b1   : > { %v4026_v0 = vld [vmem:[#allocation3 + $0x18] sm:$0xff]  ;;  %v1955_v1 = vshrl.u32 %v4024_v62, 16  ;;  %v1958_v4 = vshll.u32 %v4024_v62, 16  ;;  %v1907_v34 = vld [vmem:[#allocation3 + $0x20] sm:$0x7f]  ;;  %v2472_v54 = vrot.slane %v4024_v62, 1 }
 0x7b2   : > { %v1947_v2 = vshrl.u32 %v4026_v0, 16  ;;  %v1950_v8 = vshll.u32 %v4026_v0, 16  ;;  %v2074_v31 = vrot.slane %v4026_v0, 7  ;;  %v2076_v24 = vrot.slane %v1907_v34, 7  ;;  %v2603_v34 = vld [vmem:[%s3606_s11 + $0x18] sm:$0xff] }
 0x7b3   : > { %v1957_v3 = vrot.slane %v1955_v1, 7  ;;  %3120 = vmatpush3.bf16.msra.mxu1 %v3404_v61  ;;  %v2333_v43 = vrot.slane %v1958_v4, 1  ;;  %v2470_v53 = vrot.slane %v4026_v0, 1 }
 0x7b4   : > { %v1949_v7 = vrot.slane %v1947_v2, 7  ;;  %3121 = vmatprep.subr.bf16.mxu1 %v3405_v63  ;;  %v2075_v33 = vsel %vm2068_vm6, %v2072_v13, %v2074_v31  ;;  %v2077_v36 = vsel %vm2068_vm6, %v2074_v31, %v2076_v24  ;;  %v2325_v16 = vrot.slane %v1950_v8, 1 }
 0x7b5   : > { %v1960_v14 = vor.u32 %v1958_v4, %v1957_v3  ;;  %v2337_v29 = vor.u32 %v2333_v43, %v1955_v1  ;;  %v2473_v55 = vsel %vm1430_vm3, %v2470_v53, %v2472_v54 }
 0x7b6   : > { %v1952_v18 = vor.u32 %v1950_v8, %v1949_v7  ;;  %v2326_v22 = vsel %vm1237_vm5, %v2321_v17, %v2325_v16 }
 0x7b7   : > { %3122 = vmatpush3.bf16.msra.mxu1 %v3405_v63  ;;  %v1961_v30 = vsel %vm1065_vm4, %v1949_v7, %v1960_v14 }
 0x7b8   : > { %v1953_v27 = vsel %vm1065_vm4, %v1941_v45, %v1952_v18  ;;  %3131 = vmatprep.subr.bf16.mxu1 %v3406_v12  ;;  %v2297_v45 = vld [vmem:[#allocation3 + $0x28] sm:$0x1] }
 0x7b9   : > { %3111 = vmatprep.mubr.msk.bf16.mxu1 %vm349_vm1, %v1953_v27  ;;  %v2339_v23 = vshll.u32 %v2297_v45, 16  ;;  %v2474_v56 = vrot.slane %v2297_v45, 1 }
 0x7ba   : > { %3112 = vmatmul.mubr.msk.bf16.gmra.mrb[28].mxu1 %vm349_vm1, %v1961_v30 }
 0x7bb   : > { %3123 = vmatprep.mubr.msk.bf16.mxu1 %vm349_vm1, %v2071_v6  ;;  %v2341_v47 = vrot.slane %v2339_v23, 1  ;;  %v2475_v57 = vsel %vm1430_vm3, %v2472_v54, %v2474_v56  ;;  %v2601_v6 = vld [vmem:[%s3606_s11 + $0x8] sm:$0xff] }
 0x7bd   : > { %v2342_v51 = vsel %vm1237_vm5, %v2337_v29, %v2341_v47 }
 0x7c2   : > { %3124 = vmatmul.mubr.msk.bf16.vlgmr.msra.gmra.mrb[24].mxu1 %vm349_vm1, %v2073_v21 }
 0x7c3   : > { %3132 = vmatpush3.bf16.msra.mxu1 %v3406_v12  ;;  %3127 = vmatprep.mubr.msk.bf16.mxu1 %vm349_vm1, %v2075_v33 }
 0x7c4   : > { %3133 = vmatprep.subr.bf16.mxu1 %v3407_v32 }
 0x7c7   : > { %3134 = vmatpush3.bf16.msra.mxu1 %v3407_v32  ;;  %v2602_v32 = vld [vmem:[%s3606_s11 + $0x10] sm:$0xff] }
 0x7c8   : > { %3135 = vmatprep.subr.bf16.mxu1 %v3408_v35 }
 0x7ca   : > { %3128 = vmatmul.mubr.msk.bf16.gmra.mrb[28].mxu1 %vm349_vm1, %v2077_v36 }
 0x7cb   : > { %3136 = vmatpush3.bf16.msra.mxu1 %v3408_v35  ;;  %3139 = vmatprep.mubr.msk.bf16.mxu1 %vm349_vm1, %v4003_v11  ;;  %v2329_v11 = vor.u32 %v2325_v16, %v1947_v2 }
 0x7cc   : > { %3137 = vmatprep.subr.bf16.mxu1 %v3409_v19 }
 0x7cd   : > { %v2334_v28 = vsel %vm1237_vm5, %v2329_v11, %v2333_v43 }
 0x7cf   : > { %3138 = vmatpush3.bf16.msra.mxu1 %v3409_v19  ;;  %v2604_v19 = vld [vmem:[%s3606_s11 + $0x20] sm:$0xff] }
 0x7d0   : > { %3147 = vmatprep.subr.bf16.mxu1 %v3410_v37 }
 0x7d2   : > { %3140 = vmatmul.mubr.msk.bf16.vlgmr.msra.gmra.mrb[24].mxu1 %vm349_vm1, %v4001_v10  ;;  %v2471_v10 = vsel %vm1430_vm3, %v2468_v49, %v2470_v53 }
 0x7d3   : > { %3148 = vmatpush3.bf16.msra.mxu1 %v3410_v37  ;;  %3143 = vmatprep.mubr.msk.bf16.mxu1 %vm349_vm1, %v4026_v0 }
 0x7d4   : > { %3149 = vmatprep.subr.bf16.mxu1 %v3411_v9 }
 0x7d7   : > { %3150 = vmatpush3.bf16.msra.mxu1 %v3411_v9  ;;  %v2605_v9 = vld [vmem:[%s3606_s11 + $0x28] sm:$0xff] }
 0x7d8   : > { %3151 = vmatprep.subr.bf16.mxu1 %v3412_v38 }
 0x7da   : > { %3144 = vmatmul.mubr.msk.bf16.gmra.mrb[28].mxu1 %vm349_vm1, %v4024_v62 }
 0x7db   : > { %3152 = vmatpush3.bf16.msra.mxu1 %v3412_v38  ;;  %3155 = vmatprep.mubr.msk.bf16.mxu1 %vm349_vm1, %v2318_v40  ;;  %v2607_v40 = vld [vmem:[%s3606_s11 + $0x38] sm:$0xff] }
 0x7dc   : > { %3153 = vmatprep.subr.bf16.mxu1 %v3413_v26 }
 0x7df   : > { %3154 = vmatpush3.bf16.msra.mxu1 %v3413_v26 }
 0x7e0   : > { %3163 = vmatprep.subr.bf16.mxu1 %v3414_v42 }
 0x7e2   : > { %3156 = vmatmul.mubr.msk.bf16.vlgmr.msra.gmra.mrb[24].mxu1 %vm349_vm1, %v2326_v22 }
 0x7e3   : > { %3164 = vmatpush3.bf16.msra.mxu1 %v3414_v42  ;;  %3159 = vmatprep.mubr.msk.bf16.mxu1 %vm349_vm1, %v2334_v28 }
 0x7e4   : > { %3165 = vmatprep.subr.bf16.mxu1 %v3415_v44 }
 0x7e7   : > { %3166 = vmatpush3.bf16.msra.mxu1 %v3415_v44 }
 0x7e8   : > { %3167 = vmatprep.subr.bf16.mxu1 %v3416_v41 }
 0x7ea   : > { %3160 = vmatmul.mubr.msk.bf16.gmra.mrb[28].mxu1 %vm349_vm1, %v2342_v51 }
 0x7eb   : > { %3168 = vmatpush3.bf16.msra.mxu1 %v3416_v41  ;;  %3171 = vmatprep.mubr.msk.bf16.mxu1 %vm349_vm1, %v2469_v52 }
 0x7ec   : > { %3169 = vmatprep.subr.bf16.mxu1 %v3417_v50 }
 0x7ef   : > { %3170 = vmatpush3.bf16.msra.mxu1 %v3417_v50 }
 0x7f2   : > { %3172 = vmatmul.mubr.msk.bf16.vlgmr.msra.gmra.mrb[24].mxu1 %vm349_vm1, %v2471_v10 }
 0x7f3   : > { %3175 = vmatprep.mubr.msk.bf16.mxu1 %vm349_vm1, %v2473_v55 }
 0x7fa   : > { %3176 = vmatmul.mubr.msk.bf16.gmra.mrb[28].mxu1 %vm349_vm1, %v2475_v57 }
 0x8c5   : > { %v3173_v59 = vpop.f32.mrb[24].mxu1 }
 0x8c6   : > { %v2546_v60 = vpop.f32.mrb[25].mxu1  ;;  %v2594_v3 = vadd.f32 %v3173_v59, %v2862_v58 }
 0x8c7   : > { %v2592_v61 = vadd.f32 %v2862_v58, %v2546_v60  ;;  %v3174_v62 = vpop.f32.mrb[26].mxu1 }
 0x8c8   : > { %v2549_v63 = vpop.f32.mrb[27].mxu1  ;;  %v2595_v8 = vadd.f32 %v3174_v62, %v2862_v58 }
 0x8c9   : > { %2608 = vxpose.xlu1.b32.start [1/8] (short) (narrow) %v2592_v61, 64  ;;  %v2593_v0 = vadd.f32 %v2862_v58, %v2549_v63 }
 0x8cd   : > { %2609 = vxpose.xlu1.b32.cont [2/8] (short) (narrow) %v2593_v0, 64  ;;  %v3177_v1 = vpop.f32.mrb[28].mxu1 }
 0x8ce   : > { %v2562_v2 = vpop.f32.mrb[29].mxu1  ;;  %v2598_v18 = vadd.f32 %v3177_v1, %v2862_v58 }
 0x8cf   : > { %v3178_v4 = vpop.f32.mrb[30].mxu1  ;;  %v2596_v12 = vadd.f32 %v2862_v58, %v2562_v2 }
 0x8d0   : > { %v2565_v7 = vpop.f32.mrb[31].mxu1  ;;  %v2599_v20 = vadd.f32 %v3178_v4, %v2862_v58 }
 0x8d1   : > { %2610 = vxpose.xlu1.b32.cont [3/8] (short) (narrow) %v2594_v3, 64  ;;  %v2597_v14 = vadd.f32 %v2862_v58, %v2565_v7 }
 0x8d5   : > { %2611 = vxpose.xlu1.b32.cont [4/8] (short) (narrow) %v2595_v8, 64 }
 0x8d9   : > { %2612 = vxpose.xlu1.b32.cont [5/8] (short) (narrow) %v2596_v12, 64 }
 0x8dd   : > { %2613 = vxpose.xlu1.b32.cont [6/8] (short) (narrow) %v2597_v14, 64 }
 0x8e1   : > { %2614 = vxpose.xlu1.b32.cont [7/8] (short) (narrow) %v2598_v18, 64 }
 0x8e5   : > { %2615 = vxpose.xlu1.b32.end [8/8] (short) (narrow) %v2599_v20, 64 }
 0x949   : > { %v2624_v27 = vpop.trf.xlu1 }
 0x94a   : > { %v2640_v30 = vadd.f32 %v2624_v27, %v2600_v25 }
 0x94c   : > { %2648 = vst.msk [vmem:[%s4104_s26] sm:$0xff] %vm349_vm1, %v2640_v30 }
 0x94d   : > { %v2625_v13 = vpop.trf.xlu1 }
 0x94e   : > { %v2641_v31 = vadd.f32 %v2625_v13, %v2601_v6 }
 0x950   : > { %2649 = vst.msk [vmem:[%s4104_s26 + $0x8] sm:$0xff] %vm349_vm1, %v2641_v31 }
 0x951   : > { %v2626_v21 = vpop.trf.xlu1 }
 0x952   : > { %v2642_v33 = vadd.f32 %v2626_v21, %v2602_v32 }
 0x954   : > { %2650 = vst.msk [vmem:[%s4104_s26 + $0x10] sm:$0xff] %vm349_vm1, %v2642_v33 }
 0x955   : > { %v2627_v35 = vpop.trf.xlu1 }
 0x956   : > { %v2643_v24 = vadd.f32 %v2627_v35, %v2603_v34 }
 0x958   : > { %2651 = vst.msk [vmem:[%s4104_s26 + $0x18] sm:$0xff] %vm349_vm1, %v2643_v24 }
 0x959   : > { %v2628_v36 = vpop.trf.xlu1 }
 0x95a   : > { %v2644_v37 = vadd.f32 %v2628_v36, %v2604_v19 }
 0x95c   : > { %2652 = vst.msk [vmem:[%s4104_s26 + $0x20] sm:$0xff] %vm349_vm1, %v2644_v37 }
 0x95d   : > { %v2629_v15 = vpop.trf.xlu1 }
 0x95e   : > { %v2645_v38 = vadd.f32 %v2629_v15, %v2605_v9 }
 0x960   : > { %2653 = vst.msk [vmem:[%s4104_s26 + $0x28] sm:$0xff] %vm349_vm1, %v2645_v38 }
 0x961   : > { %v2630_v5 = vpop.trf.xlu1 }
 0x962   : > { %v2646_v26 = vadd.f32 %v2630_v5, %v2606_v39 }
 0x964   : > { %2654 = vst.msk [vmem:[%s4104_s26 + $0x30] sm:$0xff] %vm349_vm1, %v2646_v26 }
 0x965   : > { %v2631_v16 = vpop.trf.xlu1 }
 0x966   : > { %v2647_v42 = vadd.f32 %v2631_v16, %v2607_v40 }
 0x968   : > { %2655 = vst.msk [vmem:[%s4104_s26 + $0x38] sm:$0xff] %vm349_vm1, %v2647_v42 }
 0x969 PF: > { %s20_s30 = sadd.s32 1, %s3490_s30  }
 0x96a   : > { %p17_p3 = scmp.ge.s32.totalorder %s20_s30, 4  }
 0x96c   :  { %19 = sbr.rel (!%p17_p3) target bundleno = 1 (0x1), region = 98 }
 0x973   :  { %2677 = vsyncpa [#allocation5], 1 }
 0x974   :  { %2679 = vsyncpa [#allocation5 + $0x1], 1 }

</bundles_post_ra>
